<compile_context>
chip_gen: v7x
topology: tpu7x:2x2x1
jax: 0.10.0
libtpu: 0.0.40
codegen_flags: <defaults>
</compile_context>

<pallas_src>
import functools

import numpy as np
import jax
import jax.numpy as jnp
from jax import lax
from jax.experimental import pallas as pl
from jax.experimental.pallas import tpu as pltpu

# ----------------------- deterministic spline configuration -----------------
MIN_U, STEP_U, NCELLS_U = 0.0, 2.0, 4          # u in [0, 8]
MIN_V, STEP_V, NCELLS_V = 0.0, 2.0, 4          # v in [0, 8]
MIN_D, STEP_D, NCELLS_D = 0.0, 2.0, 4          # d in [0, 8]
NCTRL_U = NCELLS_U + 3                         # 7
NCTRL_V = NCELLS_V + 3                         # 7
NCTRL_D = NCELLS_D + 3                         # 7
# cell_is_calib grid: [s - 2 for s in (uv ctrl shape + d ctrl shape)]
CAL_U, CAL_V, CAL_D = NCTRL_U - 2, NCTRL_V - 2, NCTRL_D - 2   # 5, 5, 5
PFLAT = CAL_U * CAL_V * CAL_D                                 # 125
NWORDS = (PFLAT + 31) // 32                                   # 4 packed int32 words

LANES = 128           # lane width of the point layout (lane-dense output)
CHUNK = 8             # rows per in-kernel chunk -> (8, 128) = 1 vreg / array
MAX_TILE_ROWS = 512   # up to 64K points per pipelined grid step


# ------------------------------ kernel helpers -------------------------------
def _cell(x, mn, step, ncells):
    """Clamped cell id, fractional coordinate and validity mask."""
    t = (x - mn) * (1.0 / step)
    cc = jnp.clip(jnp.floor(t), 0.0, float(ncells - 1))
    f = t - cc
    ci = cc.astype(jnp.int32)
    valid = (x >= mn) & (x <= mn + step * ncells)
    return ci, f, valid


def _basis(f):
    """Cubic B-spline basis; b2 via partition of unity."""
    omf = 1.0 - f
    f2 = f * f
    f3 = f2 * f
    b0 = omf * omf * omf * (1.0 / 6.0)
    b1 = (3.0 * f3 - 6.0 * f2 + 4.0) * (1.0 / 6.0)
    b3 = f3 * (1.0 / 6.0)
    b2 = 1.0 - b0 - b1 - b3
    return (b0, b1, b2, b3)


def _undistort_kernel(pts_ref, puv_ref, dcoef_ref, calib_ref, out_ref,
                      *, uncalib_val, tile_rows):
    # pts_ref:   VMEM f32 [3, tile_rows, LANES]   (u / v / d planes)
    # puv_ref:   SMEM f32 [NCTRL_U * NCTRL_V]     (row-major uv control points)
    # dcoef_ref: SMEM f32 [NCELLS_D * 4]          (per-cell Horner coeffs of d)
    # calib_ref: SMEM int32 [NWORDS]              (bit-packed cell_is_calib)
    # out_ref:   VMEM f32 [tile_rows, LANES]
    n_chunks = tile_rows // CHUNK

    def chunk_body(c_idx, carry):
        r0 = pl.multiple_of(c_idx * CHUNK, CHUNK)
        u = pts_ref[0, pl.ds(r0, CHUNK), :]
        v = pts_ref[1, pl.ds(r0, CHUNK), :]

        cu, fu, valid_u = _cell(u, MIN_U, STEP_U, NCELLS_U)
        cv, fv, valid_v = _cell(v, MIN_V, STEP_V, NCELLS_V)

        # per-dim cell-equality masks, hoisted once and shared by every select
        mu = [cu == c for c in range(NCELLS_U)]
        mv = [cv == c for c in range(NCELLS_V)]

        bu = _basis(fu)
        bv = _basis(fv)

        # v-direction control-point weights (short select chains, shared masks)
        zero = jnp.zeros_like(fv)
        wv = []
        for j in range(NCTRL_V):
            cs = [c for c in range(NCELLS_V) if 0 <= j - c <= 3]
            if len(cs) == NCELLS_V:
                expr = bv[j - cs[-1]]
                rest = cs[:-1]
            else:
                expr = zero
                rest = cs
            for c in reversed(rest):
                expr = jnp.where(mv[c], bv[j - c], expr)
            wv.append(expr)

        # per-u-control-point row sums over v: rv[i] = sum_j P[i, j] * wv[j]
        # (scalar control points from SMEM, full-vreg VPU MACs; no MXU/XLU)
        rv = []
        for i in range(NCTRL_U):
            acc = wv[0] * puv_ref[i * NCTRL_V + 0]
            for j in range(1, NCTRL_V):
                acc = acc + wv[j] * puv_ref[i * NCTRL_V + j]
            rv.append(acc)

        # uv_spline = sum_a bu[a] * rv[cu + a]  (select the 4 active rows)
        uv_val = None
        for a in range(4):
            sel = rv[(NCELLS_U - 1) + a]
            for c in range(NCELLS_U - 2, -1, -1):
                sel = jnp.where(mu[c], rv[c + a], sel)
            term = bu[a] * sel
            uv_val = term if uv_val is None else uv_val + term

        # d spline: per-cell Horner cubic with host-folded coefficients
        dd = pts_ref[2, pl.ds(r0, CHUNK), :]
        cd, fd, valid_d = _cell(dd, MIN_D, STEP_D, NCELLS_D)
        md = [cd == c for c in range(NCELLS_D)]
        coef = []
        for k in range(4):
            expr = dcoef_ref[(NCELLS_D - 1) * 4 + k]
            for c in range(NCELLS_D - 2, -1, -1):
                expr = jnp.where(md[c], dcoef_ref[c * 4 + k], expr)
            coef.append(expr)
        a0, a1, a2, a3 = coef
        d_val = ((a3 * fd + a2) * fd + a1) * fd + a0

        # cell_is_calib[cu, cv, cd] via bit-packed lookup: 125 bits in 4 int32
        # words.  flat uses the CLAMPED cell ids, so it is always in
        # [0, PFLAT); out-of-range points are killed by the validity mask.
        flat = cu * (CAL_V * CAL_D) + cv * CAL_D + cd
        word_idx = flat >> 5
        bit = flat & 31
        word = calib_ref[NWORDS - 1]
        for w in range(NWORDS - 2, -1, -1):
            word = jnp.where(word_idx == w, calib_ref[w], word)
        hit = (lax.shift_right_logical(word, bit) & 1) != 0

        is_calib = valid_u & valid_v & valid_d & hit
        out_ref[pl.ds(r0, CHUNK), :] = jnp.where(
            is_calib, uv_val * d_val, jnp.float32(uncalib_val))
        return carry

    # bound live ranges to one (8, 128) chunk; unroll=2 only when it divides
    unroll = 2 if (n_chunks % 2 == 0) else 1
    lax.fori_loop(0, n_chunks, chunk_body, 0, unroll=unroll)


# ------------------------------ host-side glue --------------------------------
def _round_up(x, m):
    return -(-x // m) * m


def _pack_calib_bits(cell_is_calib):
    """Pack the [CAL_U, CAL_V, CAL_D] bool grid into NWORDS int32 words."""
    bits = jnp.asarray(cell_is_calib, jnp.bool_).reshape(-1)
    bits = jnp.pad(bits.astype(jnp.uint32), (0, NWORDS * 32 - PFLAT))
    shifts = jnp.arange(32, dtype=jnp.uint32)
    words = jnp.sum(bits.reshape(NWORDS, 32) << shifts[None, :],
                    axis=1, dtype=jnp.uint32)
    return lax.bitcast_convert_type(words, jnp.int32)           # [NWORDS] int32


def _d_horner_coeffs(d_ctrl):
    """Fold the d control points into per-cell cubic Horner coefficients."""
    pd = jnp.asarray(d_ctrl, jnp.float32)
    p0 = pd[0:NCELLS_D]
    p1 = pd[1:NCELLS_D + 1]
    p2 = pd[2:NCELLS_D + 2]
    p3 = pd[3:NCELLS_D + 3]
    a0 = (p0 + 4.0 * p1 + p2) * (1.0 / 6.0)
    a1 = (p2 - p0) * 0.5
    a2 = (p0 - 2.0 * p1 + p2) * 0.5
    a3 = (-p0 + 3.0 * p1 - 3.0 * p2 + p3) * (1.0 / 6.0)
    return jnp.stack([a0, a1, a2, a3], axis=1).reshape(-1)      # [NCELLS_D * 4]


def pix_batch_uv_d_undistort(uv, d, uv_ctrl, d_ctrl, cell_is_calib,
                             uncalib_val=float("nan"),
                             *, lanes=LANES, max_tile_rows=MAX_TILE_ROWS):
    """uv: [B, 2] f32, d: [B, 1] f32 -> undist_d: [B] f32."""
    B = uv.shape[0]

    # -- adaptive tiling: small padding, even (>=2) grid steps for 2-TC v7x ---
    rows = max(CHUNK, _round_up(-(-B // lanes), CHUNK))
    n_tiles = -(-rows // max_tile_rows)
    if n_tiles == 1 and rows >= 2 * CHUNK:
        n_tiles = 2                      # keep both v7x TensorCores busy
    if n_tiles > 1 and n_tiles % 2:
        n_tiles += 1                     # even step count -> balanced split
    tile_rows = _round_up(-(-rows // n_tiles), CHUNK)
    rows_pad = n_tiles * tile_rows
    Bp = rows_pad * lanes

    # -- pack u/v/d into one planar [3, rows_pad, lanes] array (1 DMA / step) -
    # NOTE(perf): in production keep the batch pre-packed in this layout
    # upstream; the transpose/pad below is one extra XLA pass over the input.
    sentinel = min(MIN_U, MIN_V, MIN_D) - 1.0    # out of range -> uncalibrated
    pts = jnp.concatenate([uv.astype(jnp.float32), d.astype(jnp.float32)],
                          axis=1)                                   # [B, 3]
    pts = jnp.pad(pts, ((0, Bp - B), (0, 0)), constant_values=sentinel)
    pts = pts.T.reshape(3, rows_pad, lanes)

    puv_flat = jnp.asarray(uv_ctrl, jnp.float32).reshape(NCTRL_U * NCTRL_V)
    dcoef = _d_horner_coeffs(d_ctrl)
    calib_packed = _pack_calib_bits(cell_is_calib)

    kernel = functools.partial(_undistort_kernel,
                               uncalib_val=float(uncalib_val),
                               tile_rows=tile_rows)
    pts_spec = pl.BlockSpec((3, tile_rows, lanes), lambda i: (0, i, 0))
    smem_spec = pl.BlockSpec(memory_space=pltpu.MemorySpace.SMEM)

    out2 = pl.pallas_call(
        kernel,
        out_shape=jax.ShapeDtypeStruct((rows_pad, lanes), jnp.float32),
        grid=(n_tiles,),
        in_specs=[pts_spec, smem_spec, smem_spec, smem_spec],
        out_specs=pl.BlockSpec((tile_rows, lanes), lambda i: (i, 0)),
        compiler_params=pltpu.CompilerParams(
            dimension_semantics=("parallel",)),
        cost_estimate=pl.CostEstimate(flops=240 * Bp, transcendentals=0,
                                      bytes_accessed=16 * Bp),
    )(pts, puv_flat, dcoef, calib_packed)

    return out2.reshape(Bp)[:B]


# ------------------------------- pure-JAX reference --------------------------
def reference(uv, d, uv_ctrl, d_ctrl, cell_is_calib, uncalib_val=float("nan")):
    def cells(x, mn, step, ncells):
        t = (x - mn) / step
        cc = jnp.clip(jnp.floor(t), 0.0, ncells - 1).astype(jnp.int32)
        f = t - cc
        valid = (x >= mn) & (x <= mn + step * ncells)
        return jnp.where(valid, cc, -1), cc, f, valid

    def basis(f):
        f2, f3 = f * f, f * f * f
        return jnp.stack([(1 - f) ** 3 / 6, (3 * f3 - 6 * f2 + 4) / 6,
                          (-3 * f3 + 3 * f2 + 3 * f + 1) / 6, f3 / 6], axis=-1)

    u, v, dd = uv[:, 0], uv[:, 1], d[:, 0]
    iu, cu, fu, vu = cells(u, MIN_U, STEP_U, NCELLS_U)
    iv, cv, fv, vv = cells(v, MIN_V, STEP_V, NCELLS_V)
    idd, cd, fd, vd = cells(dd, MIN_D, STEP_D, NCELLS_D)
    bu, bv, bd = basis(fu), basis(fv), basis(fd)                 # [B, 4]
    offs = jnp.arange(4)
    Pg = uv_ctrl[(cu[:, None] + offs)[:, :, None],
                 (cv[:, None] + offs)[:, None, :]]               # [B, 4, 4]
    uv_val = jnp.sum(bu[:, :, None] * bv[:, None, :] * Pg, axis=(1, 2))
    d_val = jnp.sum(bd * d_ctrl[cd[:, None] + offs], axis=-1)
    is_calib = vu & vv & vd & cell_is_calib[iu, iv, idd]
    return jnp.where(is_calib, uv_val * d_val, uncalib_val)


if __name__ == "__main__":
    key = jax.random.PRNGKey(0)
    k1, k2, k3, k4 = jax.random.split(key, 4)
    B = 6000   # ragged on purpose: exercises padding and a 2-step grid

    # Inputs: some points deliberately outside [min, max] -> uncalibrated (NaN).
    uv = jax.random.uniform(k1, (B, 2), jnp.float32, minval=-1.0, maxval=9.0)
    d = jax.random.uniform(k2, (B, 1), jnp.float32, minval=-1.0, maxval=9.0)

    # Deterministic "trained" spline control points.
    uv_ctrl = jax.random.normal(k3, (NCTRL_U, NCTRL_V), jnp.float32)
    d_ctrl = jax.random.normal(k4, (NCTRL_D,), jnp.float32)

    # cell_is_calib is all-False in the torch __init__; mark a deterministic
    # checkerboard of cells as calibrated so both branches are exercised.
    ii, jj, kk = jnp.meshgrid(jnp.arange(CAL_U), jnp.arange(CAL_V),
                              jnp.arange(CAL_D), indexing="ij")
    cell_is_calib = ((ii + jj + kk) % 2) == 0

    out = pix_batch_uv_d_undistort(uv, d, uv_ctrl, d_ctrl, cell_is_calib)
    out = jax.block_until_ready(out)

    ref = reference(uv, d, uv_ctrl, d_ctrl, cell_is_calib)
    assert out.shape == (B,) and out.dtype == jnp.float32
    np.testing.assert_allclose(np.asarray(out), np.asarray(ref),
                               rtol=1e-4, atol=1e-5, equal_nan=True)
    print("KERNEL_OK")
</pallas_src>

<mosaic_0001>
module attributes {stable_mosaic.version = 11 : i64} {
  func.func @_undistort_kernel(%arg0: i32, %arg1: memref<3x24x128xf32, #tpu.memory_space<vmem>>, %arg2: memref<49xf32, #tpu.memory_space<smem>>, %arg3: memref<16xf32, #tpu.memory_space<smem>>, %arg4: memref<4xi32, #tpu.memory_space<smem>>, %arg5: memref<24x128xf32, #tpu.memory_space<vmem>>) attributes {dimension_semantics = [#tpu.dimension_semantics<parallel>], iteration_bounds = array<i64: 2>, scalar_prefetch = 0 : i64, scratch_operands = 0 : i64, tpu.core_type = #tpu.core_type<tc>, window_params = [{transform_indices = @transform_0, window_bounds = array<i64: 3, 24, 128>}, {transform_indices = @transform_1, window_bounds = array<i64: 49>}, {transform_indices = @transform_2, window_bounds = array<i64: 16>}, {transform_indices = @transform_3, window_bounds = array<i64: 4>}, {transform_indices = @transform_4, window_bounds = array<i64: 24, 128>}]} {
    %c0_i32 = arith.constant 0 : i32
    %c3_i32 = arith.constant 3 : i32
    %0 = arith.addi %c0_i32, %c3_i32 : i32
    %c1_i32 = arith.constant 1 : i32
    scf.for %arg6 = %c0_i32 to %0 step %c1_i32  : i32 {
      %c8_i32 = arith.constant 8 : i32
      %1 = arith.muli %arg6, %c8_i32 : i32
      %2 = tpu.assume_multiple %1, 8 : i32
      %c0 = arith.constant 0 : index
      %3 = arith.index_cast %2 : i32 to index
      %c0_1 = arith.constant 0 : index
      %4 = vector.load %arg1[%c0, %3, %c0_1] : memref<3x24x128xf32, #tpu.memory_space<vmem>>, vector<1x8x128xf32>
      %5 = vector.shape_cast %4 : vector<1x8x128xf32> to vector<8x128xf32>
      %c1 = arith.constant 1 : index
      %6 = arith.index_cast %2 : i32 to index
      %c0_2 = arith.constant 0 : index
      %7 = vector.load %arg1[%c1, %6, %c0_2] : memref<3x24x128xf32, #tpu.memory_space<vmem>>, vector<1x8x128xf32>
      %8 = vector.shape_cast %7 : vector<1x8x128xf32> to vector<8x128xf32>
      %cst = arith.constant 0.000000e+00 : f32
      %9 = vector.broadcast %cst : f32 to vector<8x128xf32>
      %10 = arith.subf %5, %9 : vector<8x128xf32>
      %cst_3 = arith.constant 5.000000e-01 : f32
      %11 = vector.broadcast %cst_3 : f32 to vector<8x128xf32>
      %12 = arith.mulf %10, %11 : vector<8x128xf32>
      %13 = math.floor %12 : vector<8x128xf32>
      %cst_4 = arith.constant 0.000000e+00 : f32
      %cst_5 = arith.constant 3.000000e+00 : f32
      %14 = vector.broadcast %cst_4 : f32 to vector<8x128xf32>
      %15 = arith.maximumf %14, %13 : vector<8x128xf32>
      %16 = vector.broadcast %cst_5 : f32 to vector<8x128xf32>
      %17 = arith.minimumf %16, %15 : vector<8x128xf32>
      %18 = arith.subf %12, %17 : vector<8x128xf32>
      %19 = arith.fptosi %17 : vector<8x128xf32> to vector<8x128xi32>
      %cst_6 = arith.constant 0.000000e+00 : f32
      %20 = vector.broadcast %cst_6 : f32 to vector<8x128xf32>
      %21 = arith.cmpf oge, %5, %20 : vector<8x128xf32>
      %cst_7 = arith.constant 8.000000e+00 : f32
      %22 = vector.broadcast %cst_7 : f32 to vector<8x128xf32>
      %23 = arith.cmpf ole, %5, %22 : vector<8x128xf32>
      %24 = arith.andi %21, %23 : vector<8x128xi1>
      %cst_8 = arith.constant 0.000000e+00 : f32
      %25 = vector.broadcast %cst_8 : f32 to vector<8x128xf32>
      %26 = arith.subf %8, %25 : vector<8x128xf32>
      %cst_9 = arith.constant 5.000000e-01 : f32
      %27 = vector.broadcast %cst_9 : f32 to vector<8x128xf32>
      %28 = arith.mulf %26, %27 : vector<8x128xf32>
      %29 = math.floor %28 : vector<8x128xf32>
      %cst_10 = arith.constant 0.000000e+00 : f32
      %cst_11 = arith.constant 3.000000e+00 : f32
      %30 = vector.broadcast %cst_10 : f32 to vector<8x128xf32>
      %31 = arith.maximumf %30, %29 : vector<8x128xf32>
      %32 = vector.broadcast %cst_11 : f32 to vector<8x128xf32>
      %33 = arith.minimumf %32, %31 : vector<8x128xf32>
      %34 = arith.subf %28, %33 : vector<8x128xf32>
      %35 = arith.fptosi %33 : vector<8x128xf32> to vector<8x128xi32>
      %cst_12 = arith.constant 0.000000e+00 : f32
      %36 = vector.broadcast %cst_12 : f32 to vector<8x128xf32>
      %37 = arith.cmpf oge, %8, %36 : vector<8x128xf32>
      %cst_13 = arith.constant 8.000000e+00 : f32
      %38 = vector.broadcast %cst_13 : f32 to vector<8x128xf32>
      %39 = arith.cmpf ole, %8, %38 : vector<8x128xf32>
      %40 = arith.andi %37, %39 : vector<8x128xi1>
      %c0_i32_14 = arith.constant 0 : i32
      %41 = vector.broadcast %c0_i32_14 : i32 to vector<8x128xi32>
      %42 = arith.cmpi eq, %19, %41 : vector<8x128xi32>
      %c1_i32_15 = arith.constant 1 : i32
      %43 = vector.broadcast %c1_i32_15 : i32 to vector<8x128xi32>
      %44 = arith.cmpi eq, %19, %43 : vector<8x128xi32>
      %c2_i32 = arith.constant 2 : i32
      %45 = vector.broadcast %c2_i32 : i32 to vector<8x128xi32>
      %46 = arith.cmpi eq, %19, %45 : vector<8x128xi32>
      %c0_i32_16 = arith.constant 0 : i32
      %47 = vector.broadcast %c0_i32_16 : i32 to vector<8x128xi32>
      %48 = arith.cmpi eq, %35, %47 : vector<8x128xi32>
      %c1_i32_17 = arith.constant 1 : i32
      %49 = vector.broadcast %c1_i32_17 : i32 to vector<8x128xi32>
      %50 = arith.cmpi eq, %35, %49 : vector<8x128xi32>
      %c2_i32_18 = arith.constant 2 : i32
      %51 = vector.broadcast %c2_i32_18 : i32 to vector<8x128xi32>
      %52 = arith.cmpi eq, %35, %51 : vector<8x128xi32>
      %c3_i32_19 = arith.constant 3 : i32
      %53 = vector.broadcast %c3_i32_19 : i32 to vector<8x128xi32>
      %54 = arith.cmpi eq, %35, %53 : vector<8x128xi32>
      %cst_20 = arith.constant 1.000000e+00 : f32
      %55 = vector.broadcast %cst_20 : f32 to vector<8x128xf32>
      %56 = arith.subf %55, %18 : vector<8x128xf32>
      %57 = arith.mulf %18, %18 : vector<8x128xf32>
      %58 = arith.mulf %57, %18 : vector<8x128xf32>
      %59 = arith.mulf %56, %56 : vector<8x128xf32>
      %60 = arith.mulf %59, %56 : vector<8x128xf32>
      %cst_21 = arith.constant 0.166666672 : f32
      %61 = vector.broadcast %cst_21 : f32 to vector<8x128xf32>
      %62 = arith.mulf %60, %61 : vector<8x128xf32>
      %cst_22 = arith.constant 3.000000e+00 : f32
      %63 = vector.broadcast %cst_22 : f32 to vector<8x128xf32>
      %64 = arith.mulf %63, %58 : vector<8x128xf32>
      %cst_23 = arith.constant 6.000000e+00 : f32
      %65 = vector.broadcast %cst_23 : f32 to vector<8x128xf32>
      %66 = arith.mulf %65, %57 : vector<8x128xf32>
      %67 = arith.subf %64, %66 : vector<8x128xf32>
      %cst_24 = arith.constant 4.000000e+00 : f32
      %68 = vector.broadcast %cst_24 : f32 to vector<8x128xf32>
      %69 = arith.addf %67, %68 : vector<8x128xf32>
      %cst_25 = arith.constant 0.166666672 : f32
      %70 = vector.broadcast %cst_25 : f32 to vector<8x128xf32>
      %71 = arith.mulf %69, %70 : vector<8x128xf32>
      %cst_26 = arith.constant 0.166666672 : f32
      %72 = vector.broadcast %cst_26 : f32 to vector<8x128xf32>
      %73 = arith.mulf %58, %72 : vector<8x128xf32>
      %cst_27 = arith.constant 1.000000e+00 : f32
      %74 = vector.broadcast %cst_27 : f32 to vector<8x128xf32>
      %75 = arith.subf %74, %62 : vector<8x128xf32>
      %76 = arith.subf %75, %71 : vector<8x128xf32>
      %77 = arith.subf %76, %73 : vector<8x128xf32>
      %cst_28 = arith.constant 1.000000e+00 : f32
      %78 = vector.broadcast %cst_28 : f32 to vector<8x128xf32>
      %79 = arith.subf %78, %34 : vector<8x128xf32>
      %80 = arith.mulf %34, %34 : vector<8x128xf32>
      %81 = arith.mulf %80, %34 : vector<8x128xf32>
      %82 = arith.mulf %79, %79 : vector<8x128xf32>
      %83 = arith.mulf %82, %79 : vector<8x128xf32>
      %cst_29 = arith.constant 0.166666672 : f32
      %84 = vector.broadcast %cst_29 : f32 to vector<8x128xf32>
      %85 = arith.mulf %83, %84 : vector<8x128xf32>
      %cst_30 = arith.constant 3.000000e+00 : f32
      %86 = vector.broadcast %cst_30 : f32 to vector<8x128xf32>
      %87 = arith.mulf %86, %81 : vector<8x128xf32>
      %cst_31 = arith.constant 6.000000e+00 : f32
      %88 = vector.broadcast %cst_31 : f32 to vector<8x128xf32>
      %89 = arith.mulf %88, %80 : vector<8x128xf32>
      %90 = arith.subf %87, %89 : vector<8x128xf32>
      %cst_32 = arith.constant 4.000000e+00 : f32
      %91 = vector.broadcast %cst_32 : f32 to vector<8x128xf32>
      %92 = arith.addf %90, %91 : vector<8x128xf32>
      %cst_33 = arith.constant 0.166666672 : f32
      %93 = vector.broadcast %cst_33 : f32 to vector<8x128xf32>
      %94 = arith.mulf %92, %93 : vector<8x128xf32>
      %cst_34 = arith.constant 0.166666672 : f32
      %95 = vector.broadcast %cst_34 : f32 to vector<8x128xf32>
      %96 = arith.mulf %81, %95 : vector<8x128xf32>
      %cst_35 = arith.constant 1.000000e+00 : f32
      %97 = vector.broadcast %cst_35 : f32 to vector<8x128xf32>
      %98 = arith.subf %97, %85 : vector<8x128xf32>
      %99 = arith.subf %98, %94 : vector<8x128xf32>
      %100 = arith.subf %99, %96 : vector<8x128xf32>
      %cst_36 = arith.constant 0.000000e+00 : f32
      %101 = vector.broadcast %cst_36 : f32 to vector<8x128xf32>
      %102 = arith.select %48, %85, %101 : vector<8x128xi1>, vector<8x128xf32>
      %103 = arith.select %50, %85, %101 : vector<8x128xi1>, vector<8x128xf32>
      %104 = arith.select %48, %94, %103 : vector<8x128xi1>, vector<8x128xf32>
      %105 = arith.select %52, %85, %101 : vector<8x128xi1>, vector<8x128xf32>
      %106 = arith.select %50, %94, %105 : vector<8x128xi1>, vector<8x128xf32>
      %107 = arith.select %48, %100, %106 : vector<8x128xi1>, vector<8x128xf32>
      %108 = arith.select %52, %94, %85 : vector<8x128xi1>, vector<8x128xf32>
      %109 = arith.select %50, %100, %108 : vector<8x128xi1>, vector<8x128xf32>
      %110 = arith.select %48, %96, %109 : vector<8x128xi1>, vector<8x128xf32>
      %111 = arith.select %54, %94, %101 : vector<8x128xi1>, vector<8x128xf32>
      %112 = arith.select %52, %100, %111 : vector<8x128xi1>, vector<8x128xf32>
      %113 = arith.select %50, %96, %112 : vector<8x128xi1>, vector<8x128xf32>
      %114 = arith.select %54, %100, %101 : vector<8x128xi1>, vector<8x128xf32>
      %115 = arith.select %52, %96, %114 : vector<8x128xi1>, vector<8x128xf32>
      %116 = arith.select %54, %96, %101 : vector<8x128xi1>, vector<8x128xf32>
      %c0_37 = arith.constant 0 : index
      %117 = memref.load %arg2[%c0_37] : memref<49xf32, #tpu.memory_space<smem>>
      %118 = vector.broadcast %117 : f32 to vector<8x128xf32>
      %119 = arith.mulf %102, %118 : vector<8x128xf32>
      %c1_38 = arith.constant 1 : index
      %120 = memref.load %arg2[%c1_38] : memref<49xf32, #tpu.memory_space<smem>>
      %121 = vector.broadcast %120 : f32 to vector<8x128xf32>
      %122 = arith.mulf %104, %121 : vector<8x128xf32>
      %123 = arith.addf %119, %122 : vector<8x128xf32>
      %c2 = arith.constant 2 : index
      %124 = memref.load %arg2[%c2] : memref<49xf32, #tpu.memory_space<smem>>
      %125 = vector.broadcast %124 : f32 to vector<8x128xf32>
      %126 = arith.mulf %107, %125 : vector<8x128xf32>
      %127 = arith.addf %123, %126 : vector<8x128xf32>
      %c3 = arith.constant 3 : index
      %128 = memref.load %arg2[%c3] : memref<49xf32, #tpu.memory_space<smem>>
      %129 = vector.broadcast %128 : f32 to vector<8x128xf32>
      %130 = arith.mulf %110, %129 : vector<8x128xf32>
      %131 = arith.addf %127, %130 : vector<8x128xf32>
      %c4 = arith.constant 4 : index
      %132 = memref.load %arg2[%c4] : memref<49xf32, #tpu.memory_space<smem>>
      %133 = vector.broadcast %132 : f32 to vector<8x128xf32>
      %134 = arith.mulf %113, %133 : vector<8x128xf32>
      %135 = arith.addf %131, %134 : vector<8x128xf32>
      %c5 = arith.constant 5 : index
      %136 = memref.load %arg2[%c5] : memref<49xf32, #tpu.memory_space<smem>>
      %137 = vector.broadcast %136 : f32 to vector<8x128xf32>
      %138 = arith.mulf %115, %137 : vector<8x128xf32>
      %139 = arith.addf %135, %138 : vector<8x128xf32>
      %c6 = arith.constant 6 : index
      %140 = memref.load %arg2[%c6] : memref<49xf32, #tpu.memory_space<smem>>
      %141 = vector.broadcast %140 : f32 to vector<8x128xf32>
      %142 = arith.mulf %116, %141 : vector<8x128xf32>
      %143 = arith.addf %139, %142 : vector<8x128xf32>
      %c7 = arith.constant 7 : index
      %144 = memref.load %arg2[%c7] : memref<49xf32, #tpu.memory_space<smem>>
      %145 = vector.broadcast %144 : f32 to vector<8x128xf32>
      %146 = arith.mulf %102, %145 : vector<8x128xf32>
      %c8 = arith.constant 8 : index
      %147 = memref.load %arg2[%c8] : memref<49xf32, #tpu.memory_space<smem>>
      %148 = vector.broadcast %147 : f32 to vector<8x128xf32>
      %149 = arith.mulf %104, %148 : vector<8x128xf32>
      %150 = arith.addf %146, %149 : vector<8x128xf32>
      %c9 = arith.constant 9 : index
      %151 = memref.load %arg2[%c9] : memref<49xf32, #tpu.memory_space<smem>>
      %152 = vector.broadcast %151 : f32 to vector<8x128xf32>
      %153 = arith.mulf %107, %152 : vector<8x128xf32>
      %154 = arith.addf %150, %153 : vector<8x128xf32>
      %c10 = arith.constant 10 : index
      %155 = memref.load %arg2[%c10] : memref<49xf32, #tpu.memory_space<smem>>
      %156 = vector.broadcast %155 : f32 to vector<8x128xf32>
      %157 = arith.mulf %110, %156 : vector<8x128xf32>
      %158 = arith.addf %154, %157 : vector<8x128xf32>
      %c11 = arith.constant 11 : index
      %159 = memref.load %arg2[%c11] : memref<49xf32, #tpu.memory_space<smem>>
      %160 = vector.broadcast %159 : f32 to vector<8x128xf32>
      %161 = arith.mulf %113, %160 : vector<8x128xf32>
      %162 = arith.addf %158, %161 : vector<8x128xf32>
      %c12 = arith.constant 12 : index
      %163 = memref.load %arg2[%c12] : memref<49xf32, #tpu.memory_space<smem>>
      %164 = vector.broadcast %163 : f32 to vector<8x128xf32>
      %165 = arith.mulf %115, %164 : vector<8x128xf32>
      %166 = arith.addf %162, %165 : vector<8x128xf32>
      %c13 = arith.constant 13 : index
      %167 = memref.load %arg2[%c13] : memref<49xf32, #tpu.memory_space<smem>>
      %168 = vector.broadcast %167 : f32 to vector<8x128xf32>
      %169 = arith.mulf %116, %168 : vector<8x128xf32>
      %170 = arith.addf %166, %169 : vector<8x128xf32>
      %c14 = arith.constant 14 : index
      %171 = memref.load %arg2[%c14] : memref<49xf32, #tpu.memory_space<smem>>
      %172 = vector.broadcast %171 : f32 to vector<8x128xf32>
      %173 = arith.mulf %102, %172 : vector<8x128xf32>
      %c15 = arith.constant 15 : index
      %174 = memref.load %arg2[%c15] : memref<49xf32, #tpu.memory_space<smem>>
      %175 = vector.broadcast %174 : f32 to vector<8x128xf32>
      %176 = arith.mulf %104, %175 : vector<8x128xf32>
      %177 = arith.addf %173, %176 : vector<8x128xf32>
      %c16 = arith.constant 16 : index
      %178 = memref.load %arg2[%c16] : memref<49xf32, #tpu.memory_space<smem>>
      %179 = vector.broadcast %178 : f32 to vector<8x128xf32>
      %180 = arith.mulf %107, %179 : vector<8x128xf32>
      %181 = arith.addf %177, %180 : vector<8x128xf32>
      %c17 = arith.constant 17 : index
      %182 = memref.load %arg2[%c17] : memref<49xf32, #tpu.memory_space<smem>>
      %183 = vector.broadcast %182 : f32 to vector<8x128xf32>
      %184 = arith.mulf %110, %183 : vector<8x128xf32>
      %185 = arith.addf %181, %184 : vector<8x128xf32>
      %c18 = arith.constant 18 : index
      %186 = memref.load %arg2[%c18] : memref<49xf32, #tpu.memory_space<smem>>
      %187 = vector.broadcast %186 : f32 to vector<8x128xf32>
      %188 = arith.mulf %113, %187 : vector<8x128xf32>
      %189 = arith.addf %185, %188 : vector<8x128xf32>
      %c19 = arith.constant 19 : index
      %190 = memref.load %arg2[%c19] : memref<49xf32, #tpu.memory_space<smem>>
      %191 = vector.broadcast %190 : f32 to vector<8x128xf32>
      %192 = arith.mulf %115, %191 : vector<8x128xf32>
      %193 = arith.addf %189, %192 : vector<8x128xf32>
      %c20 = arith.constant 20 : index
      %194 = memref.load %arg2[%c20] : memref<49xf32, #tpu.memory_space<smem>>
      %195 = vector.broadcast %194 : f32 to vector<8x128xf32>
      %196 = arith.mulf %116, %195 : vector<8x128xf32>
      %197 = arith.addf %193, %196 : vector<8x128xf32>
      %c21 = arith.constant 21 : index
      %198 = memref.load %arg2[%c21] : memref<49xf32, #tpu.memory_space<smem>>
      %199 = vector.broadcast %198 : f32 to vector<8x128xf32>
      %200 = arith.mulf %102, %199 : vector<8x128xf32>
      %c22 = arith.constant 22 : index
      %201 = memref.load %arg2[%c22] : memref<49xf32, #tpu.memory_space<smem>>
      %202 = vector.broadcast %201 : f32 to vector<8x128xf32>
      %203 = arith.mulf %104, %202 : vector<8x128xf32>
      %204 = arith.addf %200, %203 : vector<8x128xf32>
      %c23 = arith.constant 23 : index
      %205 = memref.load %arg2[%c23] : memref<49xf32, #tpu.memory_space<smem>>
      %206 = vector.broadcast %205 : f32 to vector<8x128xf32>
      %207 = arith.mulf %107, %206 : vector<8x128xf32>
      %208 = arith.addf %204, %207 : vector<8x128xf32>
      %c24 = arith.constant 24 : index
      %209 = memref.load %arg2[%c24] : memref<49xf32, #tpu.memory_space<smem>>
      %210 = vector.broadcast %209 : f32 to vector<8x128xf32>
      %211 = arith.mulf %110, %210 : vector<8x128xf32>
      %212 = arith.addf %208, %211 : vector<8x128xf32>
      %c25 = arith.constant 25 : index
      %213 = memref.load %arg2[%c25] : memref<49xf32, #tpu.memory_space<smem>>
      %214 = vector.broadcast %213 : f32 to vector<8x128xf32>
      %215 = arith.mulf %113, %214 : vector<8x128xf32>
      %216 = arith.addf %212, %215 : vector<8x128xf32>
      %c26 = arith.constant 26 : index
      %217 = memref.load %arg2[%c26] : memref<49xf32, #tpu.memory_space<smem>>
      %218 = vector.broadcast %217 : f32 to vector<8x128xf32>
      %219 = arith.mulf %115, %218 : vector<8x128xf32>
      %220 = arith.addf %216, %219 : vector<8x128xf32>
      %c27 = arith.constant 27 : index
      %221 = memref.load %arg2[%c27] : memref<49xf32, #tpu.memory_space<smem>>
      %222 = vector.broadcast %221 : f32 to vector<8x128xf32>
      %223 = arith.mulf %116, %222 : vector<8x128xf32>
      %224 = arith.addf %220, %223 : vector<8x128xf32>
      %c28 = arith.constant 28 : index
      %225 = memref.load %arg2[%c28] : memref<49xf32, #tpu.memory_space<smem>>
      %226 = vector.broadcast %225 : f32 to vector<8x128xf32>
      %227 = arith.mulf %102, %226 : vector<8x128xf32>
      %c29 = arith.constant 29 : index
      %228 = memref.load %arg2[%c29] : memref<49xf32, #tpu.memory_space<smem>>
      %229 = vector.broadcast %228 : f32 to vector<8x128xf32>
      %230 = arith.mulf %104, %229 : vector<8x128xf32>
      %231 = arith.addf %227, %230 : vector<8x128xf32>
      %c30 = arith.constant 30 : index
      %232 = memref.load %arg2[%c30] : memref<49xf32, #tpu.memory_space<smem>>
      %233 = vector.broadcast %232 : f32 to vector<8x128xf32>
      %234 = arith.mulf %107, %233 : vector<8x128xf32>
      %235 = arith.addf %231, %234 : vector<8x128xf32>
      %c31 = arith.constant 31 : index
      %236 = memref.load %arg2[%c31] : memref<49xf32, #tpu.memory_space<smem>>
      %237 = vector.broadcast %236 : f32 to vector<8x128xf32>
      %238 = arith.mulf %110, %237 : vector<8x128xf32>
      %239 = arith.addf %235, %238 : vector<8x128xf32>
      %c32 = arith.constant 32 : index
      %240 = memref.load %arg2[%c32] : memref<49xf32, #tpu.memory_space<smem>>
      %241 = vector.broadcast %240 : f32 to vector<8x128xf32>
      %242 = arith.mulf %113, %241 : vector<8x128xf32>
      %243 = arith.addf %239, %242 : vector<8x128xf32>
      %c33 = arith.constant 33 : index
      %244 = memref.load %arg2[%c33] : memref<49xf32, #tpu.memory_space<smem>>
      %245 = vector.broadcast %244 : f32 to vector<8x128xf32>
      %246 = arith.mulf %115, %245 : vector<8x128xf32>
      %247 = arith.addf %243, %246 : vector<8x128xf32>
      %c34 = arith.constant 34 : index
      %248 = memref.load %arg2[%c34] : memref<49xf32, #tpu.memory_space<smem>>
      %249 = vector.broadcast %248 : f32 to vector<8x128xf32>
      %250 = arith.mulf %116, %249 : vector<8x128xf32>
      %251 = arith.addf %247, %250 : vector<8x128xf32>
      %c35 = arith.constant 35 : index
      %252 = memref.load %arg2[%c35] : memref<49xf32, #tpu.memory_space<smem>>
      %253 = vector.broadcast %252 : f32 to vector<8x128xf32>
      %254 = arith.mulf %102, %253 : vector<8x128xf32>
      %c36 = arith.constant 36 : index
      %255 = memref.load %arg2[%c36] : memref<49xf32, #tpu.memory_space<smem>>
      %256 = vector.broadcast %255 : f32 to vector<8x128xf32>
      %257 = arith.mulf %104, %256 : vector<8x128xf32>
      %258 = arith.addf %254, %257 : vector<8x128xf32>
      %c37 = arith.constant 37 : index
      %259 = memref.load %arg2[%c37] : memref<49xf32, #tpu.memory_space<smem>>
      %260 = vector.broadcast %259 : f32 to vector<8x128xf32>
      %261 = arith.mulf %107, %260 : vector<8x128xf32>
      %262 = arith.addf %258, %261 : vector<8x128xf32>
      %c38 = arith.constant 38 : index
      %263 = memref.load %arg2[%c38] : memref<49xf32, #tpu.memory_space<smem>>
      %264 = vector.broadcast %263 : f32 to vector<8x128xf32>
      %265 = arith.mulf %110, %264 : vector<8x128xf32>
      %266 = arith.addf %262, %265 : vector<8x128xf32>
      %c39 = arith.constant 39 : index
      %267 = memref.load %arg2[%c39] : memref<49xf32, #tpu.memory_space<smem>>
      %268 = vector.broadcast %267 : f32 to vector<8x128xf32>
      %269 = arith.mulf %113, %268 : vector<8x128xf32>
      %270 = arith.addf %266, %269 : vector<8x128xf32>
      %c40 = arith.constant 40 : index
      %271 = memref.load %arg2[%c40] : memref<49xf32, #tpu.memory_space<smem>>
      %272 = vector.broadcast %271 : f32 to vector<8x128xf32>
      %273 = arith.mulf %115, %272 : vector<8x128xf32>
      %274 = arith.addf %270, %273 : vector<8x128xf32>
      %c41 = arith.constant 41 : index
      %275 = memref.load %arg2[%c41] : memref<49xf32, #tpu.memory_space<smem>>
      %276 = vector.broadcast %275 : f32 to vector<8x128xf32>
      %277 = arith.mulf %116, %276 : vector<8x128xf32>
      %278 = arith.addf %274, %277 : vector<8x128xf32>
      %c42 = arith.constant 42 : index
      %279 = memref.load %arg2[%c42] : memref<49xf32, #tpu.memory_space<smem>>
      %280 = vector.broadcast %279 : f32 to vector<8x128xf32>
      %281 = arith.mulf %102, %280 : vector<8x128xf32>
      %c43 = arith.constant 43 : index
      %282 = memref.load %arg2[%c43] : memref<49xf32, #tpu.memory_space<smem>>
      %283 = vector.broadcast %282 : f32 to vector<8x128xf32>
      %284 = arith.mulf %104, %283 : vector<8x128xf32>
      %285 = arith.addf %281, %284 : vector<8x128xf32>
      %c44 = arith.constant 44 : index
      %286 = memref.load %arg2[%c44] : memref<49xf32, #tpu.memory_space<smem>>
      %287 = vector.broadcast %286 : f32 to vector<8x128xf32>
      %288 = arith.mulf %107, %287 : vector<8x128xf32>
      %289 = arith.addf %285, %288 : vector<8x128xf32>
      %c45 = arith.constant 45 : index
      %290 = memref.load %arg2[%c45] : memref<49xf32, #tpu.memory_space<smem>>
      %291 = vector.broadcast %290 : f32 to vector<8x128xf32>
      %292 = arith.mulf %110, %291 : vector<8x128xf32>
      %293 = arith.addf %289, %292 : vector<8x128xf32>
      %c46 = arith.constant 46 : index
      %294 = memref.load %arg2[%c46] : memref<49xf32, #tpu.memory_space<smem>>
      %295 = vector.broadcast %294 : f32 to vector<8x128xf32>
      %296 = arith.mulf %113, %295 : vector<8x128xf32>
      %297 = arith.addf %293, %296 : vector<8x128xf32>
      %c47 = arith.constant 47 : index
      %298 = memref.load %arg2[%c47] : memref<49xf32, #tpu.memory_space<smem>>
      %299 = vector.broadcast %298 : f32 to vector<8x128xf32>
      %300 = arith.mulf %115, %299 : vector<8x128xf32>
      %301 = arith.addf %297, %300 : vector<8x128xf32>
      %c48 = arith.constant 48 : index
      %302 = memref.load %arg2[%c48] : memref<49xf32, #tpu.memory_space<smem>>
      %303 = vector.broadcast %302 : f32 to vector<8x128xf32>
      %304 = arith.mulf %116, %303 : vector<8x128xf32>
      %305 = arith.addf %301, %304 : vector<8x128xf32>
      %306 = arith.select %46, %197, %224 : vector<8x128xi1>, vector<8x128xf32>
      %307 = arith.select %44, %170, %306 : vector<8x128xi1>, vector<8x128xf32>
      %308 = arith.select %42, %143, %307 : vector<8x128xi1>, vector<8x128xf32>
      %309 = arith.mulf %62, %308 : vector<8x128xf32>
      %310 = arith.select %46, %224, %251 : vector<8x128xi1>, vector<8x128xf32>
      %311 = arith.select %44, %197, %310 : vector<8x128xi1>, vector<8x128xf32>
      %312 = arith.select %42, %170, %311 : vector<8x128xi1>, vector<8x128xf32>
      %313 = arith.mulf %71, %312 : vector<8x128xf32>
      %314 = arith.addf %309, %313 : vector<8x128xf32>
      %315 = arith.select %46, %251, %278 : vector<8x128xi1>, vector<8x128xf32>
      %316 = arith.select %44, %224, %315 : vector<8x128xi1>, vector<8x128xf32>
      %317 = arith.select %42, %197, %316 : vector<8x128xi1>, vector<8x128xf32>
      %318 = arith.mulf %77, %317 : vector<8x128xf32>
      %319 = arith.addf %314, %318 : vector<8x128xf32>
      %320 = arith.select %46, %278, %305 : vector<8x128xi1>, vector<8x128xf32>
      %321 = arith.select %44, %251, %320 : vector<8x128xi1>, vector<8x128xf32>
      %322 = arith.select %42, %224, %321 : vector<8x128xi1>, vector<8x128xf32>
      %323 = arith.mulf %73, %322 : vector<8x128xf32>
      %324 = arith.addf %319, %323 : vector<8x128xf32>
      %c2_39 = arith.constant 2 : index
      %325 = arith.index_cast %2 : i32 to index
      %c0_40 = arith.constant 0 : index
      %326 = vector.load %arg1[%c2_39, %325, %c0_40] : memref<3x24x128xf32, #tpu.memory_space<vmem>>, vector<1x8x128xf32>
      %327 = vector.shape_cast %326 : vector<1x8x128xf32> to vector<8x128xf32>
      %cst_41 = arith.constant 0.000000e+00 : f32
      %328 = vector.broadcast %cst_41 : f32 to vector<8x128xf32>
      %329 = arith.subf %327, %328 : vector<8x128xf32>
      %cst_42 = arith.constant 5.000000e-01 : f32
      %330 = vector.broadcast %cst_42 : f32 to vector<8x128xf32>
      %331 = arith.mulf %329, %330 : vector<8x128xf32>
      %332 = math.floor %331 : vector<8x128xf32>
      %cst_43 = arith.constant 0.000000e+00 : f32
      %cst_44 = arith.constant 3.000000e+00 : f32
      %333 = vector.broadcast %cst_43 : f32 to vector<8x128xf32>
      %334 = arith.maximumf %333, %332 : vector<8x128xf32>
      %335 = vector.broadcast %cst_44 : f32 to vector<8x128xf32>
      %336 = arith.minimumf %335, %334 : vector<8x128xf32>
      %337 = arith.subf %331, %336 : vector<8x128xf32>
      %338 = arith.fptosi %336 : vector<8x128xf32> to vector<8x128xi32>
      %cst_45 = arith.constant 0.000000e+00 : f32
      %339 = vector.broadcast %cst_45 : f32 to vector<8x128xf32>
      %340 = arith.cmpf oge, %327, %339 : vector<8x128xf32>
      %cst_46 = arith.constant 8.000000e+00 : f32
      %341 = vector.broadcast %cst_46 : f32 to vector<8x128xf32>
      %342 = arith.cmpf ole, %327, %341 : vector<8x128xf32>
      %343 = arith.andi %340, %342 : vector<8x128xi1>
      %c0_i32_47 = arith.constant 0 : i32
      %344 = vector.broadcast %c0_i32_47 : i32 to vector<8x128xi32>
      %345 = arith.cmpi eq, %338, %344 : vector<8x128xi32>
      %c1_i32_48 = arith.constant 1 : i32
      %346 = vector.broadcast %c1_i32_48 : i32 to vector<8x128xi32>
      %347 = arith.cmpi eq, %338, %346 : vector<8x128xi32>
      %c2_i32_49 = arith.constant 2 : i32
      %348 = vector.broadcast %c2_i32_49 : i32 to vector<8x128xi32>
      %349 = arith.cmpi eq, %338, %348 : vector<8x128xi32>
      %c12_50 = arith.constant 12 : index
      %350 = memref.load %arg3[%c12_50] : memref<16xf32, #tpu.memory_space<smem>>
      %c8_51 = arith.constant 8 : index
      %351 = memref.load %arg3[%c8_51] : memref<16xf32, #tpu.memory_space<smem>>
      %352 = vector.broadcast %351 : f32 to vector<8x128xf32>
      %353 = vector.broadcast %350 : f32 to vector<8x128xf32>
      %354 = arith.select %349, %352, %353 : vector<8x128xi1>, vector<8x128xf32>
      %c4_52 = arith.constant 4 : index
      %355 = memref.load %arg3[%c4_52] : memref<16xf32, #tpu.memory_space<smem>>
      %356 = vector.broadcast %355 : f32 to vector<8x128xf32>
      %357 = arith.select %347, %356, %354 : vector<8x128xi1>, vector<8x128xf32>
      %c0_53 = arith.constant 0 : index
      %358 = memref.load %arg3[%c0_53] : memref<16xf32, #tpu.memory_space<smem>>
      %359 = vector.broadcast %358 : f32 to vector<8x128xf32>
      %360 = arith.select %345, %359, %357 : vector<8x128xi1>, vector<8x128xf32>
      %c13_54 = arith.constant 13 : index
      %361 = memref.load %arg3[%c13_54] : memref<16xf32, #tpu.memory_space<smem>>
      %c9_55 = arith.constant 9 : index
      %362 = memref.load %arg3[%c9_55] : memref<16xf32, #tpu.memory_space<smem>>
      %363 = vector.broadcast %362 : f32 to vector<8x128xf32>
      %364 = vector.broadcast %361 : f32 to vector<8x128xf32>
      %365 = arith.select %349, %363, %364 : vector<8x128xi1>, vector<8x128xf32>
      %c5_56 = arith.constant 5 : index
      %366 = memref.load %arg3[%c5_56] : memref<16xf32, #tpu.memory_space<smem>>
      %367 = vector.broadcast %366 : f32 to vector<8x128xf32>
      %368 = arith.select %347, %367, %365 : vector<8x128xi1>, vector<8x128xf32>
      %c1_57 = arith.constant 1 : index
      %369 = memref.load %arg3[%c1_57] : memref<16xf32, #tpu.memory_space<smem>>
      %370 = vector.broadcast %369 : f32 to vector<8x128xf32>
      %371 = arith.select %345, %370, %368 : vector<8x128xi1>, vector<8x128xf32>
      %c14_58 = arith.constant 14 : index
      %372 = memref.load %arg3[%c14_58] : memref<16xf32, #tpu.memory_space<smem>>
      %c10_59 = arith.constant 10 : index
      %373 = memref.load %arg3[%c10_59] : memref<16xf32, #tpu.memory_space<smem>>
      %374 = vector.broadcast %373 : f32 to vector<8x128xf32>
      %375 = vector.broadcast %372 : f32 to vector<8x128xf32>
      %376 = arith.select %349, %374, %375 : vector<8x128xi1>, vector<8x128xf32>
      %c6_60 = arith.constant 6 : index
      %377 = memref.load %arg3[%c6_60] : memref<16xf32, #tpu.memory_space<smem>>
      %378 = vector.broadcast %377 : f32 to vector<8x128xf32>
      %379 = arith.select %347, %378, %376 : vector<8x128xi1>, vector<8x128xf32>
      %c2_61 = arith.constant 2 : index
      %380 = memref.load %arg3[%c2_61] : memref<16xf32, #tpu.memory_space<smem>>
      %381 = vector.broadcast %380 : f32 to vector<8x128xf32>
      %382 = arith.select %345, %381, %379 : vector<8x128xi1>, vector<8x128xf32>
      %c15_62 = arith.constant 15 : index
      %383 = memref.load %arg3[%c15_62] : memref<16xf32, #tpu.memory_space<smem>>
      %c11_63 = arith.constant 11 : index
      %384 = memref.load %arg3[%c11_63] : memref<16xf32, #tpu.memory_space<smem>>
      %385 = vector.broadcast %384 : f32 to vector<8x128xf32>
      %386 = vector.broadcast %383 : f32 to vector<8x128xf32>
      %387 = arith.select %349, %385, %386 : vector<8x128xi1>, vector<8x128xf32>
      %c7_64 = arith.constant 7 : index
      %388 = memref.load %arg3[%c7_64] : memref<16xf32, #tpu.memory_space<smem>>
      %389 = vector.broadcast %388 : f32 to vector<8x128xf32>
      %390 = arith.select %347, %389, %387 : vector<8x128xi1>, vector<8x128xf32>
      %c3_65 = arith.constant 3 : index
      %391 = memref.load %arg3[%c3_65] : memref<16xf32, #tpu.memory_space<smem>>
      %392 = vector.broadcast %391 : f32 to vector<8x128xf32>
      %393 = arith.select %345, %392, %390 : vector<8x128xi1>, vector<8x128xf32>
      %394 = arith.mulf %393, %337 : vector<8x128xf32>
      %395 = arith.addf %394, %382 : vector<8x128xf32>
      %396 = arith.mulf %395, %337 : vector<8x128xf32>
      %397 = arith.addf %396, %371 : vector<8x128xf32>
      %398 = arith.mulf %397, %337 : vector<8x128xf32>
      %399 = arith.addf %398, %360 : vector<8x128xf32>
      %c25_i32 = arith.constant 25 : i32
      %400 = vector.broadcast %c25_i32 : i32 to vector<8x128xi32>
      %401 = arith.muli %19, %400 : vector<8x128xi32>
      %c5_i32 = arith.constant 5 : i32
      %402 = vector.broadcast %c5_i32 : i32 to vector<8x128xi32>
      %403 = arith.muli %35, %402 : vector<8x128xi32>
      %404 = arith.addi %401, %403 : vector<8x128xi32>
      %405 = arith.addi %404, %338 : vector<8x128xi32>
      %c5_i32_66 = arith.constant 5 : i32
      %406 = vector.broadcast %c5_i32_66 : i32 to vector<8x128xi32>
      %407 = arith.shrsi %405, %406 : vector<8x128xi32>
      %c31_i32 = arith.constant 31 : i32
      %408 = vector.broadcast %c31_i32 : i32 to vector<8x128xi32>
      %409 = arith.andi %405, %408 : vector<8x128xi32>
      %c3_67 = arith.constant 3 : index
      %410 = memref.load %arg4[%c3_67] : memref<4xi32, #tpu.memory_space<smem>>
      %c2_i32_68 = arith.constant 2 : i32
      %411 = vector.broadcast %c2_i32_68 : i32 to vector<8x128xi32>
      %412 = arith.cmpi eq, %407, %411 : vector<8x128xi32>
      %c2_69 = arith.constant 2 : index
      %413 = memref.load %arg4[%c2_69] : memref<4xi32, #tpu.memory_space<smem>>
      %414 = vector.broadcast %413 : i32 to vector<8x128xi32>
      %415 = vector.broadcast %410 : i32 to vector<8x128xi32>
      %416 = arith.select %412, %414, %415 : vector<8x128xi1>, vector<8x128xi32>
      %c1_i32_70 = arith.constant 1 : i32
      %417 = vector.broadcast %c1_i32_70 : i32 to vector<8x128xi32>
      %418 = arith.cmpi eq, %407, %417 : vector<8x128xi32>
      %c1_71 = arith.constant 1 : index
      %419 = memref.load %arg4[%c1_71] : memref<4xi32, #tpu.memory_space<smem>>
      %420 = vector.broadcast %419 : i32 to vector<8x128xi32>
      %421 = arith.select %418, %420, %416 : vector<8x128xi1>, vector<8x128xi32>
      %c0_i32_72 = arith.constant 0 : i32
      %422 = vector.broadcast %c0_i32_72 : i32 to vector<8x128xi32>
      %423 = arith.cmpi eq, %407, %422 : vector<8x128xi32>
      %c0_73 = arith.constant 0 : index
      %424 = memref.load %arg4[%c0_73] : memref<4xi32, #tpu.memory_space<smem>>
      %425 = vector.broadcast %424 : i32 to vector<8x128xi32>
      %426 = arith.select %423, %425, %421 : vector<8x128xi1>, vector<8x128xi32>
      %427 = arith.shrui %426, %409 : vector<8x128xi32>
      %c1_i32_74 = arith.constant 1 : i32
      %428 = vector.broadcast %c1_i32_74 : i32 to vector<8x128xi32>
      %429 = arith.andi %427, %428 : vector<8x128xi32>
      %c0_i32_75 = arith.constant 0 : i32
      %430 = vector.broadcast %c0_i32_75 : i32 to vector<8x128xi32>
      %431 = arith.cmpi ne, %429, %430 : vector<8x128xi32>
      %432 = arith.andi %24, %40 : vector<8x128xi1>
      %433 = arith.andi %432, %343 : vector<8x128xi1>
      %434 = arith.andi %433, %431 : vector<8x128xi1>
      %435 = arith.mulf %324, %399 : vector<8x128xf32>
      %cst_76 = arith.constant 0x7FC00000 : f32
      %436 = vector.broadcast %cst_76 : f32 to vector<8x128xf32>
      %437 = arith.select %434, %435, %436 : vector<8x128xi1>, vector<8x128xf32>
      %438 = arith.index_cast %2 : i32 to index
      %c0_77 = arith.constant 0 : index
      %439 = vector.load %arg5[%438, %c0_77] : memref<24x128xf32, #tpu.memory_space<vmem>>, vector<8x128xf32>
      tpu.vector_store %arg5[%438, %c0_77], %437 {strides = array<i32>} : memref<24x128xf32, #tpu.memory_space<vmem>>, vector<8x128xf32>,
    }
    %c3_i32_0 = arith.constant 3 : i32
    return
  }
  func.func @transform_0(%arg0: i32) -> (i32, i32, i32) {
    %c0_i32 = arith.constant 0 : i32
    %c0_i32_0 = arith.constant 0 : i32
    %c0_i32_1 = arith.constant 0 : i32
    return %c0_i32, %arg0, %c0_i32_0 : i32, i32, i32
  }
  func.func @transform_1(%arg0: i32) -> i32 {
    %c0_i32 = arith.constant 0 : i32
    %c0_i32_0 = arith.constant 0 : i32
    return %c0_i32 : i32
  }
  func.func @transform_2(%arg0: i32) -> i32 {
    %c0_i32 = arith.constant 0 : i32
    %c0_i32_0 = arith.constant 0 : i32
    return %c0_i32 : i32
  }
  func.func @transform_3(%arg0: i32) -> i32 {
    %c0_i32 = arith.constant 0 : i32
    %c0_i32_0 = arith.constant 0 : i32
    return %c0_i32 : i32
  }
  func.func @transform_4(%arg0: i32) -> (i32, i32) {
    %c0_i32 = arith.constant 0 : i32
    %c0_i32_0 = arith.constant 0 : i32
    return %arg0, %c0_i32 : i32, i32
  }
}

</mosaic_0001>

<bundles_post_ra>
// kernel: tpu_custom_call.1
= control target key start
LH: loop header
LB: loop body
LE: loop exit
PB: predicated region body
PF: predicated region fallthrough
CT: control target
= control target key end

     0   :  { %s1855_s0 = inlined_call_operand.hbm [shape: f32[3,48,128], index: 0, kind: input, shape index: {}]   ;;  %s1856_s1 = inlined_call_operand.vmem [shape: f32[49], index: 1, kind: input, shape index: {}]   ;;  %s1857_s2 = inlined_call_operand.vmem [shape: f32[16], index: 2, kind: input, shape index: {}]   ;;  %s1858_s3 = inlined_call_operand.vmem [shape: s32[4], index: 3, kind: input, shape index: {}]   ;;  %s1859_s4 = inlined_call_operand.hbm [shape: f32[48,128], index: 4, kind: output, shape index: {}]  }
   0x1   :  { %1867 = sst [smem:[#allocation21_spill]] %s1855_s0 }
   0x2   :  { %1868 = sst [smem:[#allocation22_spill]] %s1856_s1 }
   0x3   :  { %1869 = sst [smem:[#allocation23_spill]] %s1857_s2 }
   0x4   :  { %1870 = sst [smem:[#allocation24_spill]] %s1858_s3 }
   0x5   :  { %9 = vsyncpa [#allocation3], 0 }
   0x6   :  { %11 = vsyncpa [#allocation3 + $0x1], 0 }
   0x7   :  { %12 = vsyncpa [#allocation5], 0 }
   0x8   :  { %13 = vsyncpa [#allocation8], 0 }
   0x9   :  { %14 = vsyncpa [#allocation4], 0 }
   0xa   :  { %16 = vsyncpa [#allocation4 + $0x1], 0  ;;  %s1159_s15 = smov 0   ;;  %s1161_s16 = smov 0  }
   0xb   :  { %s1163_s17 = smov 0   ;;  %s1165_s18 = smov 0  }
   0xc LB: > { %1871 = sst [smem:[#allocation18_spill]] %s1112_s17  ;;  %s1180_s19 = sadd.s32 4294967295, %s1116_s18   ;;  %s1116_s18 = sphi %s1165_s18, %s1903_s18   ;;  %s1112_s17 = sphi %s1163_s17, %s1900_s17   ;;  %s1108_s16 = sphi %s1161_s16, %s1902_s16   ;;  %s1104_s15 = sphi %s1159_s15, %s1901_s15  }
   0xd   : > { %s800_s20 = sadd.s32 4294967294, %s1116_s18   ;;  %s1184_s21 = sadd.s32 1, %s1116_s18  }
   0xe   : > { %s29_s22 = sadd.s32 1, %s1112_s17  ;;  %s26_s23 = ssub.s32 %s1116_s18, %s1184_s21 }
   0xf   : > { %p36_p0 = scmp.ne.s32.totalorder %s1112_s17, %s1108_s16  ;;  %p27_p1 = scmp.eq.s32.totalorder %s26_s23, 0 }
  0x10   : > { %p37_p2 = scmp.eq.s32.totalorder %s1116_s18, 0  ;;  %p42_p3 = scmp.ne.s32.totalorder %s1108_s16, %s1104_s15 }
  0x11   : > { %p1860_p4 = scmp.eq.s32.totalorder %s1180_s19, 0  ;;  %p129_p7 = scmp.eq.s32.totalorder %s1180_s19, 1 }
  0x12   : > { %s1196_s24 = scalar_select %p27_p1, %s1112_s17, %s29_s22  }
  0x13   : > { %p1198_p5 = por %p37_p2, %p36_p0  ;;  %p1204_p6 = por %p1860_p4, %p42_p3 }
  0x14   : > { %1872 = sst [smem:[#allocation19_spill]] %s1196_s24  ;;  %p135_p8 = scmp.eq.s32.totalorder %s800_s20, 1 }
  0x15   : > { %s1873_s25 = scalar_select %p1198_p5, 1, 0 }
  0x16   : > { %s1874_s26 = scalar_select %p1204_p6, 1, 0 }
  0x17   : > { %p801_p9 = scmp.ge.s32.totalorder %s1116_s18, 1  ;;  %p142_p10 = scmp.lt.s32.totalorder %s1116_s18, 3 }
  0x18   : > { %p1211_p11 = por %p129_p7, %p36_p0  ;;  %p1215_p12 = por %p135_p8, %p42_p3 }
  0x19   : > { %p1219_p13 = pnand %p801_p9, %p142_p10  ;;  %s1878_s2 = sld [smem:[#allocation23_spill]] }
  0x1a   : > { %s1875_s27 = scalar_select %p1211_p11, 1, 0 }
  0x1b   : > { %s1876_s28 = scalar_select %p1215_p12, 1, 0 }
  0x1c   : > { %s1877_s29 = scalar_select %p1219_p13, 1, 0 }
  0x1d   : > { %p921_p1 = pneg %p1219_p13  ;;  %s1879_s1 = sld [smem:[#allocation22_spill]] }
  0x1e   : > { %s1881_s3 = sld [smem:[#allocation24_spill]] }
  0x1f   : > { %s166_s6 = sshll.u32 %s1878_s2, 4  ;;  %p1233_p0 = pnand %p921_p1, %p1860_p4  ;;  %s167_s6 = int_to_ptr.vmem [resolvable:$true] %s166_s6 }
  0x20   : > { %s993_s14 = scalar_lea.vmem %s167_s6, 16  ;;  %p1001_p9 = scmp.lt.s32.totalorder %s167_s6, %s167_s6 }
  0x21   : > { %p994_p2 = scmp.ne.s32.totalorder %s167_s6, %s993_s14  ;;  %p995_p3 = pneg %p1233_p0 }
  0x22   : > { %p1002_p10 = scmp.lt.s32.totalorder %s993_s14, %s993_s14 }
  0x23   : > { %s155_s9 = sshll.u32 %s1879_s1, 4  ;;  %p996_p7 = pnand %p995_p3, %p994_p2  ;;  %s156_s9 = int_to_ptr.vmem [resolvable:$true] %s155_s9 }
  0x24   : > { %s177_s13 = sshll.u32 %s1881_s3, 4  ;;  %p1003_p1 = por %p1002_p10, %p1001_p9  ;;  %s1240_s13 = int_to_ptr.vmem [resolvable:$true] %s177_s13 }
  0x25   : > { %p997_p8 = pneg %p996_p7 }
  0x27   : > { %p1004_p4 = pnand %p1003_p1, %p997_p8 }
  0x29   : > { %1007 = shalt.err (!%p1004_p4)
}
  0x2a   : > { %s1122_s20 = smov [#allocation7]   ;;  %s1008_s22 = scalar_lea.vmem %s156_s9, 16 }
  0x2b   : > { %927 = dma.vmem_to_smem (!%p1233_p0), %s167_s6, 16, %s1122_s20, [#allocation8]  }
  0x2c   : > { %p1009_p12 = scmp.ne.s32.totalorder %s156_s9, %s1008_s22  ;;  %p1016_p13 = scmp.lt.s32.totalorder %s156_s9, %s156_s9 }
  0x2d   : > { %p1017_p5 = scmp.lt.s32.totalorder %s1008_s22, %s1008_s22 }
  0x2e   : > { %p1011_p11 = pnand %p1009_p12, %p995_p3 }
  0x2f   : > { %p1018_p2 = por %p1017_p5, %p1016_p13 }
  0x30   : > { %p1012_p6 = pneg %p1011_p11 }
  0x32   : > { %p1019_p7 = pnand %p1018_p2, %p1012_p6 }
  0x34   : > { %1022 = shalt.err (!%p1019_p7)
}
  0x35   : > { %s1123_s23 = smov [#allocation6]   ;;  %s1023_s30 = scalar_lea.vmem %s1240_s13, 16 }
  0x36   : > { %924 = dma.vmem_to_smem (!%p1233_p0), %s156_s9, 16, %s1123_s23, [#allocation5]  }
  0x37   : > { %p1024_p4 = scmp.ne.s32.totalorder %s1240_s13, %s1023_s30  ;;  %p1031_p11 = scmp.lt.s32.totalorder %s1240_s13, %s1240_s13 }
  0x38   : > { %p1032_p9 = scmp.lt.s32.totalorder %s1023_s30, %s1023_s30 }
  0x39   : > { %p1026_p8 = pnand %p1024_p4, %p995_p3 }
  0x3a   : > { %p1033_p5 = por %p1032_p9, %p1031_p11 }
  0x3b   : > { %p1027_p12 = pneg %p1026_p8 }
  0x3d   : > { %p1034_p6 = pnand %p1033_p5, %p1027_p12 }
  0x3f   : > { %1037 = shalt.err (!%p1034_p6)
}
  0x40   : > { %s1124_s5 = smov [#allocation9]   ;;  %p805_p13 = scmp.ge.s32.totalorder %s1116_s18, 2 }
  0x41   : > { %930 = dma.vmem_to_smem (!%p1233_p0), %s1240_s13, 16, %s1124_s5, [#allocation8]  }
  0x42   : > { %184 = sbr.rel (%p805_p13) target bundleno = 89 (0x59), region = 28 }
  0x49   : > { %s188_s6 = sand.u32 1, %s1112_s17   ;;  %s887_s7 = smul.u32 384, %s1116_s18 }
  0x4a   : > { %s889_s8 = smul.u32 72, %s188_s6  ;;  %s1125_s9 = smov 768  }
  0x4b   : > { %p1882_p3 = scmp.ne.s32.totalorder %s1873_s25, 0  ;;  %s1883_s0 = sld [smem:[#allocation21_spill]] }
  0x4c   : > { %s192_s20 = scalar_lea.vmem [#allocation2], %s889_s8  ;;  %s1126_s23 = smov 384  }
  0x4d   : > { %905 = sst [smem:[#allocation12]] (%p1882_p3), %s1125_s9  ;;  %s211_s22 = sshll.u32 %s192_s20, 4  ;;  %s212_s22 = int_to_ptr.vmem [resolvable:$true] %s211_s22 }
  0x4e   : > { %s904_s10 = scalar_select %p1882_p3, [#allocation0], [#allocation13] }
  0x4f   : > { %906 = sst [smem:[#allocation12 + $0x1]] (%p1882_p3), %s1126_s23  ;;  %s1127_s30 = smov 3  }
  0x50   : > { %s203_s14 = sld [smem:[%s904_s10]]   ;;  %s1128_s5 = smov 128  }
  0x51   : > { %s198_s13 = scalar_lea.hbm %s1883_s0, %s887_s7  ;;  %907 = sst [smem:[#allocation12 + $0x2]] (%p1882_p3), %s1127_s30 }
  0x52   : > { %908 = sst [smem:[#allocation12 + $0x3]] (%p1882_p3), %s1128_s5  ;;  %s1129_s9 = smov 8  }
  0x53   : > { %909 = sst [smem:[#allocation12 + $0x4]] (%p1882_p3), %s1128_s5  ;;  %s189_s8 = scalar_lea.sflag [#allocation3], %s188_s6 }
  0x54   : > { %910 = sst [smem:[#allocation12 + $0x5]] (%p1882_p3), %s1129_s9  ;;  %s1130_s11 = smov [#allocation11]  }
  0x56   : > { %s807_s7 = sshll.u32 %s203_s14, 26 }
  0x57   : > { %s808_s10 = sadd.s32 134217728, %s807_s7 }
  0x58   : > { %911 = dma.general (%p1882_p3), %s198_s13, 1152, %s212_s22, %s189_s8, %s1130_s11, [#allocation12], %s808_s10, 0  }
  0x59 PF: > { %p1884_p0 = scmp.ne.s32.totalorder %s1877_s29, 0 }
  0x5b   : > { %236 = sbr.rel (%p1884_p0) target bundleno = 223 (0xdf), region = 36 }
  0x62   : > { %s1291_s12 = sand.u32 1, %s1108_s16   ;;  %p1886_p10 = scmp.ne.s32.totalorder %s1874_s26, 0 }
  0x63   : > { %s890_s20 = smul.u32 72, %s1291_s12  ;;  %s239_s23 = scalar_lea.sflag [#allocation3], %s1291_s12 }
  0x65   : > { %s1295_s30 = scalar_lea.vmem [#allocation2], %s890_s20 }
  0x66   : > { %1885 = sst [smem:[#allocation20_spill]] %s1295_s30 }
  0x67   : > { %1087 = dma.done.wait (%p1886_p10), %s239_s23, 1152  }
  0x68   : > { %1089 = vsyncadd (%p1886_p10), %s239_s23, 4294966144  ;;  %p1887_p1 = scmp.eq.s32.totalorder %s1180_s19, 0 }
  0x6a   : > { %1091 = dma.done.wait (%p1887_p1), [#allocation5], 16   ;;  %p1888_p2 = pmov %p1887_p1 }
  0x6b   : > { %p1889_p7 = pmov %p1887_p1 }
  0x6c   : > { %1093 = vsyncadd (%p1888_p2), [#allocation5], 4294967280 }
  0x6d   : > { %1095 = dma.done.wait (%p1889_p7), [#allocation8], 32   ;;  %p1890_p4 = pmov %p1887_p1 }
  0x6f   : > { %1097 = vsyncadd (%p1890_p4), [#allocation8], 4294967264 }
  0x70   : > { %259 = sfence }
  0x71   : > { %s891_s25 = smul.u32 24, %s1291_s12  ;;  %s1312_s6 = smov 0  }
  0x73   : > { %s1310_s29 = scalar_lea.vmem [#allocation10], %s891_s25 }
  0x74 LB: >> { %s1891_s30 = sld [smem:[#allocation20_spill]]  ;;  %s1865_s26 = sshll.u32 %s1120_s6, 3  ;;  %s1120_s6 = sphi %s1312_s6, %s287_s6  }
  0x75   : >> { %s1321_s14 = sld [smem:[#allocation6]]  ;;  %s1327_s22 = sld [smem:[#allocation6 + $0x1]] }
  0x76   : >> { %s1329_s5 = sld [smem:[#allocation6 + $0x2]]  ;;  %s1333_s9 = sld [smem:[#allocation6 + $0x3]] }
  0x77   : >> { %s1335_s7 = sld [smem:[#allocation6 + $0x4]]  ;;  %s1337_s10 = sld [smem:[#allocation6 + $0x5]] }
  0x78   : >> { %s1339_s8 = sld [smem:[#allocation6 + $0x6]]  ;;  %s1341_s11 = sld [smem:[#allocation6 + $0x7]] }
  0x79   : >> { %s1343_s20 = sld [smem:[#allocation6 + $0x8]]  ;;  %s1347_s23 = sld [smem:[#allocation6 + $0x9]] }
  0x7a   : >> { %s289_s13 = scalar_lea.vmem %s1891_s30, %s1865_s26  ;;  %s1349_s25 = sld [smem:[#allocation6 + $0xa]] }
  0x7b   : >> { %v1323_v0 = vld [vmem:[%s289_s13] sm:$0xff]  ;;  %v1325_v1 = vld [vmem:[%s289_s13 + $0x18] sm:$0xff]  ;;  %v1345_v6 = vld [vmem:[%s289_s13 + $0x30] sm:$0xff]  ;;  %s1351_s26 = sld [smem:[#allocation6 + $0xb]]  ;;  %s1356_s0 = sld [smem:[#allocation6 + $0xc]]  ;;  %v365_v12 = vstv %s1321_s14 }
  0x7c   : >> { %v294_v2 = vmul.f32 0.5, %v1323_v0  ;;  %v303_v3 = vmul.f32 0.5, %v1325_v1  ;;  %v1354_v9 = vmul.f32 0.5, %v1345_v6  ;;  %s1358_s1 = sld [smem:[#allocation6 + $0xd]]  ;;  %v368_v13 = vstv %s1327_s22  ;;  %s1363_s13 = sld [smem:[#allocation6 + $0xe]] }
  0x7d   : >> { %v372_v14 = vstv %s1329_s5  ;;  %v376_v20 = vstv %s1333_s9  ;;  %v380_v21 = vstv %s1335_s7  ;;  %v384_v22 = vstv %s1337_s10  ;;  %s1374_s2 = sld [smem:[#allocation6 + $0xf]]  ;;  %s1376_s3 = sld [smem:[#allocation6 + $0x10]] }
  0x7e   : >> { %v295_v4 = vfloor.f32 %v294_v2  ;;  %v304_v5 = vfloor.f32 %v303_v3  ;;  %v576_v18 = vfloor.f32 %v1354_v9  ;;  %v388_v25 = vstv %s1339_s8  ;;  %s1381_s30 = sld [smem:[#allocation6 + $0x11]]  ;;  %s1389_s8 = sld [smem:[#allocation6 + $0x12]] }
  0x7f   : >> { %v392_v26 = vstv %s1341_s11  ;;  %v395_v30 = vstv %s1343_s20  ;;  %v399_v31 = vstv %s1347_s23  ;;  %s1391_s11 = sld [smem:[#allocation6 + $0x13]]  ;;  %s1395_s24 = sld [smem:[#allocation6 + $0x15]]  ;;  %vm300_vm10 = vcmp.ge.f32.partialorder %v1323_v0, 0.0 }
  0x80   : >> { %v296_v7 = vmax.f32 %v295_v4, 0.0  ;;  %v305_v8 = vmax.f32 %v304_v5, 0.0  ;;  %v403_v32 = vstv %s1349_s25  ;;  %v1383_v34 = vmax.f32 %v576_v18, 0.0  ;;  %s1402_s17 = sld [smem:[#allocation6 + $0x14]]  ;;  %s1491_s14 = sld [smem:[#allocation6 + $0x1b]] }
  0x81   : >> { %v407_v33 = vstv %s1351_s26  ;;  %v411_v37 = vstv %s1356_s0  ;;  %s1493_s22 = sld [smem:[#allocation6 + $0x1c]]  ;;  %s1506_s20 = sld [smem:[#allocation6 + $0x1d]]  ;;  %vm301_vm11 = vcmp.le.f32.partialorder %v1323_v0, 8.0  ;;  %vm309_vm12 = vcmp.ge.f32.partialorder %v1325_v1, 0.0 }
  0x82   : >> { %v297_v10 = vmin.f32 %v296_v7, 3.0  ;;  %v306_v11 = vmin.f32 %v305_v8, 3.0  ;;  %v415_v38 = vstv %s1358_s1  ;;  %v419_v45 = vstv %s1363_s13  ;;  %s1398_s1 = sld [smem:[#allocation6 + $0x16]]  ;;  %s1519_s9 = sld [smem:[#allocation6 + $0x1f]]  ;;  %vm1773_vm15 = vmand %vm300_vm10, %vm301_vm11 }
  0x83   : >> { %v422_v57 = vstv %s1374_s2  ;;  %v426_v58 = vstv %s1376_s3  ;;  %s1427_s2 = sld [smem:[#allocation6 + $0x17]]  ;;  %s1434_s3 = sld [smem:[#allocation6 + $0x18]]  ;;  %vm310_vm13 = vcmp.le.f32.partialorder %v1325_v1, 8.0  ;;  %vm581_vm14 = vcmp.ge.f32.partialorder %v1345_v6, 0.0 }
  0x84   : >> { %v298_v15 = vsub.f32 %v294_v2, %v297_v10  ;;  %v307_v16 = vsub.f32 %v303_v3, %v306_v11  ;;  %v894_v17 = vtrunc.f32 %v306_v11  ;;  %v892_v19 = vtrunc.f32 %v297_v10  ;;  %s1517_s5 = sld [smem:[#allocation6 + $0x1e]]  ;;  %s1527_s26 = sld [smem:[#allocation6 + $0x20]] }
  0x85   : >> { %v430_v62 = vstv %s1381_s30  ;;  %v434_v4 = vstv %s1389_s8  ;;  %v438_v10 = vstv %s1391_s11  ;;  %s1467_s30 = sld [smem:[#allocation6 + $0x1a]]  ;;  %s1531_s7 = sld [smem:[#allocation6 + $0x21]] }
  0x86   : >> { %v319_v23 = vsub.f32 1.0, %v298_v15  ;;  %v320_v24 = vmul.f32 %v298_v15, %v298_v15  ;;  %v1371_v27 = vcvt.f32.s32 %v894_v17  ;;  %v334_v28 = vsub.f32 1.0, %v307_v16  ;;  %s1539_s0 = sld [smem:[#allocation6 + $0x23]]  ;;  %s1541_s23 = sld [smem:[#allocation6 + $0x24]] }
  0x87   : >> { %v335_v29 = vmul.f32 %v307_v16, %v307_v16  ;;  %v1385_v35 = vcvt.f32.s32 %v892_v19  ;;  %v446_v17 = vstv %s1395_s24  ;;  %s1465_s24 = sld [smem:[#allocation6 + $0x19]]  ;;  %s1544_s10 = sld [smem:[#allocation6 + $0x22]] }
  0x88   : >> { %v321_v36 = vmul.f32 %v320_v24, %v298_v15  ;;  %v322_v39 = vmul.f32 %v319_v23, %v319_v23  ;;  %v326_v40 = vmul.f32 6.0, %v320_v24  ;;  %v337_v42 = vmul.f32 %v334_v28, %v334_v28  ;;  %s1546_s25 = sld [smem:[#allocation6 + $0x25]]  ;;  %s1551_s13 = sld [smem:[#allocation6 + $0x26]] }
  0x89   : >> { %v336_v41 = vmul.f32 %v335_v29, %v307_v16  ;;  %vm315_vm0 = vcmp.eq.s32.totalorder %v1371_v27, 0  ;;  %v341_v44 = vmul.f32 6.0, %v335_v29  ;;  %vm316_vm1 = vcmp.eq.s32.totalorder %v1371_v27, 1  ;;  %s1553_s8 = sld [smem:[#allocation6 + $0x27]]  ;;  %s1562_s11 = sld [smem:[#allocation6 + $0x2a]] }
  0x8a   : >> { %v325_v43 = vmul.f32 3.0, %v321_v36  ;;  %v323_v46 = vmul.f32 %v322_v39, %v319_v23  ;;  %v338_v47 = vmul.f32 %v337_v42, %v334_v28  ;;  %vm317_vm2 = vcmp.eq.s32.totalorder %v1371_v27, 2 }
  0x8b   : >> { %v340_v48 = vmul.f32 3.0, %v336_v41  ;;  %vm318_vm3 = vcmp.eq.s32.totalorder %v1371_v27, 3  ;;  %v345_v50 = vmul.f32 0.16666667, %v336_v41  ;;  %v1406_v52 = vmul.f32 0.16666667, %v321_v36 }
  0x8c   : >> { %v327_v49 = vsub.f32 %v325_v43, %v326_v40  ;;  %v1404_v51 = vmul.f32 0.16666667, %v323_v46  ;;  %v339_v53 = vmul.f32 0.16666667, %v338_v47  ;;  %v449_v24 = vstv %s1398_s1  ;;  %s1570_s1 = sld [smem:[#allocation6 + $0x28]] }
  0x8d   : >> { %v342_v54 = vsub.f32 %v340_v48, %v341_v44  ;;  %v1410_v56 = vsel %vm318_vm3, %v345_v50, 0.0  ;;  %v442_v39 = vstv %s1402_s17  ;;  %s1577_s17 = sld [smem:[#allocation6 + $0x2c]]  ;;  %vm314_vm4 = vcmp.eq.s32.totalorder %v1385_v35, 2 }
  0x8e   : >> { %v328_v55 = vadd.f32 4.0, %v327_v49  ;;  %v346_v60 = vsub.f32 1.0, %v339_v53  ;;  %v1416_v61 = vsel %vm315_vm0, %v339_v53, 0.0  ;;  %v350_v63 = vsel %vm316_vm1, %v339_v53, 0.0 }
  0x8f   : >> { %v343_v59 = vadd.f32 4.0, %v342_v54  ;;  %v352_v2 = vsel %vm317_vm2, %v339_v53, 0.0  ;;  %v1424_v3 = vmul.f32 %v388_v25, %v1410_v56  ;;  %v331_v5 = vsub.f32 1.0, %v1404_v51 }
  0x90   : >> { %v1431_v8 = vmul.f32 %v415_v38, %v1410_v56  ;;  %v1436_v11 = vmul.f32 0.16666667, %v328_v55  ;;  %v366_v15 = vmul.f32 %v365_v12, %v1416_v61  ;;  %v393_v16 = vmul.f32 %v392_v26, %v1416_v61 }
  0x91   : >> { %v344_v7 = vmul.f32 0.16666667, %v343_v59  ;;  %v420_v36 = vmul.f32 %v419_v45, %v1416_v61  ;;  %v447_v42 = vmul.f32 %v446_v17, %v1416_v61  ;;  %v453_v49 = vstv %s1427_s2  ;;  %s1572_s2 = sld [smem:[#allocation6 + $0x2b]] }
  0x92   : >> { %vm313_vm5 = vcmp.eq.s32.totalorder %v1385_v35, 1  ;;  %vm312_vm6 = vcmp.eq.s32.totalorder %v1385_v35, 0 }
  0x93   : >> { %v347_v18 = vsub.f32 %v346_v60, %v344_v7  ;;  %v1445_v19 = vsel %vm315_vm0, %v344_v7, %v350_v63  ;;  %v353_v23 = vsel %vm316_vm1, %v344_v7, %v352_v2  ;;  %v355_v25 = vsel %vm317_vm2, %v344_v7, %v339_v53 }
  0x94   : >> { %v358_v28 = vsel %vm318_vm3, %v344_v7, 0.0  ;;  %v369_v12 = vmul.f32 %v368_v13, %v1445_v19  ;;  %v396_v26 = vmul.f32 %v395_v30, %v1445_v19  ;;  %v423_v38 = vmul.f32 %v422_v57, %v1445_v19 }
  0x95   : >> { %v348_v29 = vsub.f32 %v347_v18, %v345_v50  ;;  %v450_v43 = vmul.f32 %v449_v24, %v1445_v19  ;;  %v457_v57 = vstv %s1434_s3  ;;  %s1579_s3 = sld [smem:[#allocation6 + $0x2d]] }
  0x96   : >> { %v370_v40 = vadd.f32 %v369_v12, %v366_v15  ;;  %v397_v41 = vadd.f32 %v396_v26, %v393_v16  ;;  %v469_v12 = vstv %s1491_s14  ;;  %v473_v26 = vstv %s1493_s22  ;;  %s1599_s14 = sld [smem:[#allocation6 + $0x2f]]  ;;  %s1613_s22 = sld [smem:[#allocation6 + $0x30]] }
  0x97   : >> { %v1471_v13 = vsel %vm315_vm0, %v348_v29, %v353_v23  ;;  %v356_v30 = vsel %vm316_vm1, %v348_v29, %v355_v25  ;;  %v359_v44 = vsel %vm317_vm2, %v348_v29, %v358_v28  ;;  %v361_v45 = vsel %vm318_vm3, %v348_v29, 0.0 }
  0x98   : >> { %v1481_v46 = vsel %vm315_vm0, %v345_v50, %v356_v30  ;;  %v1485_v47 = vsel %vm316_vm1, %v345_v50, %v359_v44  ;;  %v373_v48 = vmul.f32 %v372_v14, %v1471_v13  ;;  %v1497_v53 = vsel %vm317_vm2, %v345_v50, %v361_v45  ;;  %vm1782_vm0 = vmand %vm309_vm12, %vm310_vm13 }
  0x99   : >> { %v377_v54 = vmul.f32 %v376_v20, %v1481_v46  ;;  %v400_v55 = vmul.f32 %v399_v31, %v1471_v13  ;;  %v381_v59 = vmul.f32 %v380_v21, %v1485_v47  ;;  %v404_v60 = vmul.f32 %v403_v32, %v1481_v46 }
  0x9a   : >> { %v374_v14 = vadd.f32 %v373_v48, %v370_v40  ;;  %v408_v50 = vmul.f32 %v407_v33, %v1485_v47  ;;  %v424_v31 = vadd.f32 %v423_v38, %v420_v36  ;;  %v427_v63 = vmul.f32 %v426_v58, %v1471_v13 }
  0x9b   : >> { %v401_v20 = vadd.f32 %v400_v55, %v397_v41  ;;  %v431_v2 = vmul.f32 %v430_v62, %v1481_v46  ;;  %v412_v32 = vmul.f32 %v411_v37, %v1497_v53  ;;  %v435_v7 = vmul.f32 %v434_v4, %v1485_v47 }
  0x9c   : >> { %v378_v21 = vadd.f32 %v377_v54, %v374_v14  ;;  %v451_v33 = vadd.f32 %v450_v43, %v447_v42  ;;  %v428_v16 = vadd.f32 %v427_v63, %v424_v31  ;;  %v454_v17 = vmul.f32 %v453_v49, %v1471_v13 }
  0x9d   : >> { %v405_v15 = vadd.f32 %v404_v60, %v401_v20  ;;  %v458_v18 = vmul.f32 %v457_v57, %v1481_v46  ;;  %v385_v58 = vmul.f32 %v384_v22, %v1497_v53  ;;  %v439_v37 = vmul.f32 %v438_v10, %v1497_v53 }
  0x9e   : >> { %v461_v62 = vstv %s1465_s24  ;;  %v465_v4 = vstv %s1467_s30  ;;  %v432_v24 = vadd.f32 %v431_v2, %v428_v16  ;;  %v455_v25 = vadd.f32 %v454_v17, %v451_v33  ;;  %s1586_s24 = sld [smem:[#allocation6 + $0x29]]  ;;  %s1594_s30 = sld [smem:[#allocation6 + $0x2e]] }
  0x9f   : >> { %v409_v23 = vadd.f32 %v408_v50, %v405_v15  ;;  %v462_v28 = vmul.f32 %v461_v62, %v1485_v47  ;;  %v382_v22 = vadd.f32 %v381_v59, %v378_v21  ;;  %v466_v10 = vmul.f32 %v465_v4, %v1497_v53 }
  0xa0   : >> { %v436_v36 = vadd.f32 %v435_v7, %v432_v24  ;;  %v459_v38 = vadd.f32 %v458_v18, %v455_v25  ;;  %v474_v40 = vmul.f32 %v473_v26, %v1416_v61  ;;  %v443_v41 = vmul.f32 %v442_v39, %v1410_v56 }
  0xa1   : >> { %v413_v29 = vadd.f32 %v412_v32, %v409_v23  ;;  %v476_v42 = vstv %s1506_s20  ;;  %v480_v43 = vstv %s1517_s5  ;;  %v484_v30 = vstv %s1519_s9  ;;  %s1631_s20 = sld [smem:[#allocation7 + $0xc]]  ;;  %s1633_s5 = sld [smem:[#allocation7 + $0x8]] }
  0xa2   : >> { %v1567_v44 = vsub.f32 %v331_v5, %v1436_v11  ;;  %v440_v45 = vadd.f32 %v439_v37, %v436_v36  ;;  %v463_v48 = vadd.f32 %v462_v28, %v459_v38  ;;  %v477_v49 = vmul.f32 %v476_v42, %v1445_v19  ;;  %s1641_s9 = sld [smem:[#allocation7 + $0x4]] }
  0xa3   : >> { %v386_v39 = vadd.f32 %v385_v58, %v382_v22  ;;  %v470_v54 = vmul.f32 %v469_v12, %v1410_v56  ;;  %v481_v55 = vmul.f32 %v480_v43, %v1471_v13  ;;  %v488_v57 = vstv %s1527_s26  ;;  %s1643_s26 = sld [smem:[#allocation7 + $0xd]] }
  0xa4   : >> { %v1583_v5 = vadd.f32 %v1431_v8, %v413_v29  ;;  %v467_v14 = vadd.f32 %v466_v10, %v463_v48  ;;  %v478_v59 = vadd.f32 %v477_v49, %v474_v40  ;;  %v485_v60 = vmul.f32 %v484_v30, %v1481_v46 }
  0xa5   : >> { %v1589_v50 = vadd.f32 %v443_v41, %v440_v45  ;;  %v492_v20 = vstv %s1531_s7  ;;  %v500_v31 = vstv %s1539_s0  ;;  %v503_v63 = vstv %s1541_s23  ;;  %s1653_s7 = sld [smem:[#allocation7 + $0x9]]  ;;  %s1655_s0 = sld [smem:[#allocation7 + $0xa]] }
  0xa6   : >> { %v482_v8 = vadd.f32 %v481_v55, %v478_v59  ;;  %v489_v2 = vmul.f32 %v488_v57, %v1485_v47  ;;  %v496_v21 = vstv %s1544_s10  ;;  %v501_v32 = vmul.f32 %v500_v31, %v1416_v61  ;;  %s1662_s23 = sld [smem:[#allocation7 + $0xe]] }
  0xa7   : >> { %v504_v7 = vmul.f32 %v503_v63, %v1445_v19  ;;  %v507_v33 = vstv %s1546_s25  ;;  %v511_v15 = vstv %s1551_s13  ;;  %v515_v16 = vstv %s1553_s8  ;;  %s1664_s10 = sld [smem:[#allocation7 + $0x6]]  ;;  %s1671_s25 = sld [smem:[#allocation7 + $0x5]] }
  0xa8   : >> { %v1606_v17 = vadd.f32 %v470_v54, %v467_v14  ;;  %v486_v18 = vadd.f32 %v485_v60, %v482_v8  ;;  %v493_v58 = vmul.f32 %v492_v20, %v1497_v53  ;;  %v508_v37 = vmul.f32 %v507_v33, %v1471_v13  ;;  %s1673_s13 = sld [smem:[#allocation7 + $0x2]]  ;;  %s1675_s8 = sld [smem:[#allocation7 + $0xb]] }
  0xa9   : >> { %v497_v62 = vmul.f32 %v496_v21, %v1410_v56  ;;  %v505_v4 = vadd.f32 %v504_v7, %v501_v32  ;;  %v512_v23 = vmul.f32 %v511_v15, %v1481_v46  ;;  %v527_v24 = vstv %s1562_s11  ;;  %s1678_s11 = sld [smem:[#allocation7 + $0xf]] }
  0xaa   : >> { %v490_v25 = vadd.f32 %v489_v2, %v486_v18  ;;  %v516_v28 = vmul.f32 %v515_v16, %v1485_v47  ;;  %v519_v22 = vstv %s1570_s1  ;;  %v528_v10 = vmul.f32 %v527_v24, %v1416_v61  ;;  %s1680_s1 = sld [smem:[#allocation7 + $0x7]] }
  0xab   : >> { %v509_v12 = vadd.f32 %v508_v37, %v505_v4  ;;  %v530_v26 = vstv %s1572_s2  ;;  %v534_v29 = vstv %s1577_s17  ;;  %v538_v36 = vstv %s1579_s3  ;;  %s1687_s2 = sld [smem:[#allocation7 + $0x3]]  ;;  %s1693_s17 = sld [smem:[#allocation7 + $0x1]] }
  0xac   : >> { %v494_v38 = vadd.f32 %v493_v58, %v490_v25  ;;  %v523_v40 = vstv %s1586_s24  ;;  %v531_v41 = vmul.f32 %v530_v26, %v1445_v19  ;;  %v535_v42 = vmul.f32 %v534_v29, %v1471_v13  ;;  %s1713_s3 = sld [smem:[#allocation7]]  ;;  %s1728_s24 = sld [smem:[#allocation9 + $0x3]] }
  0xad   : >> { %v390_v43 = vadd.f32 %v1424_v3, %v386_v39  ;;  %v513_v30 = vadd.f32 %v512_v23, %v509_v12  ;;  %v520_v45 = vmul.f32 %v519_v22, %v1497_v53  ;;  %v542_v48 = vstv %s1594_s30  ;;  %s1730_s30 = sld [smem:[#allocation9 + $0x2]] }
  0xae   : >> { %v1627_v49 = vadd.f32 %v497_v62, %v494_v38  ;;  %v532_v61 = vadd.f32 %v531_v41, %v528_v10  ;;  %v539_v54 = vmul.f32 %v538_v36, %v1481_v46  ;;  %v546_v55 = vstv %s1599_s14  ;;  %s1740_s14 = sld [smem:[#allocation9 + $0x1]] }
  0xaf   : >> { %v517_v19 = vadd.f32 %v516_v28, %v513_v30  ;;  %v524_v13 = vmul.f32 %v523_v40, %v1410_v56  ;;  %v553_v3 = vsel %vm314_vm4, %v1589_v50, %v1606_v17  ;;  %v578_v39 = vmin.f32 %v1383_v34, 3.0 }
  0xb0   : >> { %v536_v46 = vadd.f32 %v535_v42, %v532_v61  ;;  %v543_v57 = vmul.f32 %v542_v48, %v1485_v47  ;;  %v554_v14 = vsel %vm313_vm5, %v1583_v5, %v553_v3  ;;  %v557_v59 = vsel %vm314_vm4, %v1606_v17, %v1627_v49 }
  0xb1   : >> { %v521_v34 = vadd.f32 %v520_v45, %v517_v19  ;;  %v547_v60 = vmul.f32 %v546_v55, %v1497_v53  ;;  %v550_v20 = vstv %s1613_s22  ;;  %v558_v47 = vsel %vm313_vm5, %v1589_v50, %v557_v59  ;;  %s1742_s22 = sld [smem:[#allocation9]] }
  0xb2   : >> { %v540_v31 = vadd.f32 %v539_v54, %v536_v46  ;;  %v555_v63 = vsel %vm312_vm6, %v390_v43, %v554_v14  ;;  %v559_v8 = vsel %vm312_vm6, %v1583_v5, %v558_v47  ;;  %v896_v2 = vtrunc.f32 %v578_v39 }
  0xb3   : >> { %v525_v53 = vadd.f32 %v524_v13, %v521_v34  ;;  %v551_v32 = vmul.f32 %v550_v20, %v1410_v56  ;;  %v556_v5 = vmul.f32 %v555_v63, %v1404_v51  ;;  %v560_v7 = vmul.f32 %v559_v8, %v1436_v11 }
  0xb4   : >> { %v544_v21 = vadd.f32 %v543_v57, %v540_v31  ;;  %v333_v56 = vsub.f32 %v1567_v44, %v1406_v52  ;;  %v1691_v16 = vcvt.f32.s32 %v896_v2  ;;  %v1696_v51 = vsub.f32 %v1354_v9, %v578_v39 }
  0xb5   : >> { %v562_v33 = vsel %vm314_vm4, %v1627_v49, %v525_v53  ;;  %v589_v11 = vstv %s1633_s5  ;;  %v590_v18 = vstv %s1631_s20  ;;  %v593_v58 = vstv %s1641_s9  ;;  %s1896_s20 = sshll.u32 %s1120_s6, 3  ;;  %s287_s6 = sadd.s32 1, %s1120_s6  }
  0xb6   : >> { %v548_v15 = vadd.f32 %v547_v60, %v544_v21  ;;  %v563_v62 = vsel %vm313_vm5, %v1606_v17, %v562_v33  ;;  %v600_v4 = vstv %s1653_s7  ;;  %v611_v44 = vstv %s1655_s0  ;;  %s665_s5 = scalar_lea.vmem %s1310_s29, %s1896_s20 [#allocation10]  ;;  %p284_p8 = scmp.ge.s32.totalorder %s287_s6, 3  }
  0xb7   : >> { %v561_v23 = vadd.f32 %v560_v7, %v556_v5  ;;  %v601_v24 = vstv %s1643_s26  ;;  %v612_v25 = vstv %s1662_s23  ;;  %v615_v9 = vstv %s1664_s10  ;;  %s888_s9 = smul.u32 (%p284_p8), 384, %s1180_s19  ;;  %s681_s26 = sshll.u32 (%p284_p8), %s1310_s29, 4  ;;  %s1811_s26 = int_to_ptr.vmem [resolvable:$true] %s681_s26 }
  0xb8   : >> { %v552_v37 = vadd.f32 %v551_v32, %v548_v15  ;;  %vm584_vm7 = vcmp.eq.s32.totalorder %v1691_v16, 0  ;;  %vm586_vm8 = vcmp.eq.s32.totalorder %v1691_v16, 2  ;;  %v604_v22 = vstv %s1671_s25  ;;  %s668_s10 = scalar_lea.sflag (%p284_p8), [#allocation4], %s1291_s12  ;;  %s1038_s25 = scalar_lea.vmem (%p284_p8), %s1811_s26, 384 }
  0xb9   : >> { %v564_v10 = vsel %vm312_vm6, %v1589_v50, %v563_v62  ;;  %vm585_vm9 = vcmp.eq.s32.totalorder %v1691_v16, 1  ;;  %v613_v12 = vsel %vm586_vm8, %v611_v44, %v612_v25  ;;  %v622_v26 = vstv %s1675_s8  ;;  %s1809_s23 = scalar_lea.hbm (%p284_p8), %s1859_s4, %s888_s9  ;;  %p1039_p12 = scmp.ne.s32.totalorder (%p284_p8), %s1811_s26, %s1038_s25 }
  0xba   : >> { %v567_v28 = vsel %vm314_vm4, %v525_v53, %v552_v37  ;;  %v616_v29 = vsel %vm585_vm9, %v615_v9, %v613_v12  ;;  %v618_v36 = vstv %s1673_s13  ;;  %v623_v38 = vstv %s1678_s11  ;;  %p1897_p11 = scmp.ne.s32.totalorder (%p284_p8), %s1875_s27, 0  ;;  %s1131_s6 = smov (%p284_p8), [#allocation10]  }
  0xbb   : >> { %v626_v40 = vstv %s1680_s1  ;;  %v568_v50 = vsel %vm313_vm5, %v1627_v49, %v567_v28  ;;  %v602_v41 = vsel %vm586_vm8, %v600_v4, %v601_v24  ;;  %v624_v42 = vsel %vm586_vm8, %v622_v26, %v623_v38  ;;  %vm660_vm5 = vmand %vm1773_vm15, %vm1782_vm0  ;;  %s1042_s13 = sshll.u32 (%p284_p8), %s1131_s6, 4  ;;  %s1043_s13 = int_to_ptr.vmem [resolvable:$false] %s1042_s13 }
  0xbc   : >> { %v629_v43 = vstv %s1687_s2  ;;  %v607_v30 = vstv %s1693_s17  ;;  %v627_v45 = vsel %vm585_vm9, %v626_v40, %v624_v42  ;;  %v637_v48 = vmul.u32 25, %v1385_v35  ;;  %p1040_p9 = pnand (%p284_p8), %p1039_p12, %p1897_p11  ;;  %s1044_s19 = scalar_lea.vmem (%p284_p8), %s1043_s13, 768 }
  0xbd   : >> { %v638_v49 = vmul.u32 5, %v1371_v27  ;;  %v565_v61 = vmul.f32 %v564_v10, %v333_v56  ;;  %v591_v54 = vsel %vm586_vm8, %v589_v11, %v590_v18  ;;  %v619_v55 = vsel %vm584_vm7, %v618_v36, %v616_v29  ;;  %p1045_p6 = scmp.lt.s32.totalorder (%p284_p8), %s1811_s26, %s1043_s13  ;;  %p1046_p3 = scmp.lt.s32.totalorder (%p284_p8), %s1044_s19, %s1038_s25 }
  0xbe   : >> { %v630_v19 = vsel %vm584_vm7, %v629_v43, %v627_v45  ;;  %v569_v13 = vsel %vm312_vm6, %v1606_v17, %v568_v50  ;;  %v605_v3 = vsel %vm585_vm9, %v604_v22, %v602_v41  ;;  %v596_v35 = vstv %s1713_s3  ;;  %p1041_p5 = pneg (%p284_p8), %p1040_p9 }
  0xbf   : >> { %v631_v39 = vmul.f32 %v630_v19, %v1696_v51  ;;  %v639_v27 = vadd.s32 %v638_v49, %v637_v48  ;;  %v566_v57 = vadd.f32 %v565_v61, %v561_v23  ;;  %v570_v14 = vmul.f32 %v569_v13, %v1406_v52  ;;  %p1047_p0 = por (%p284_p8), %p1046_p3, %p1045_p6 }
  0xc0   : >> { %v594_v59 = vsel %vm585_vm9, %v593_v58, %v591_v54  ;;  %v608_v0 = vsel %vm584_vm7, %v607_v30, %v605_v3  ;;  %v646_v47 = vstv %s1730_s30  ;;  %v647_v31 = vstv %s1728_s24 }
  0xc1   : >> { %v632_v17 = vadd.f32 %v631_v39, %v619_v55  ;;  %v640_v46 = vadd.s32 %v1691_v16, %v639_v27  ;;  %vm582_vm1 = vcmp.le.f32.partialorder %v1345_v6, 8.0  ;;  %v651_v8 = vstv %s1740_s14  ;;  %p1048_p10 = pnand (%p284_p8), %p1047_p0, %p1041_p5 }
  0xc2   : >> { %v655_v2 = vstv %s1742_s22  ;;  %v597_v21 = vsel %vm584_vm7, %v596_v35, %v594_v59  ;;  %v571_v1 = vadd.f32 %v570_v14, %v566_v57  ;;  %vm583_vm6 = vmand %vm581_vm14, %vm582_vm1 }
  0xc3   : >> { %v633_v60 = vmul.f32 %v632_v17, %v1696_v51  ;;  %v641_v20 = vshra.s32 %v640_v46, 5  ;;  %v642_v52 = vand.u32 31, %v640_v46  ;;  %vm661_vm8 = vmand %vm660_vm5, %vm583_vm6 }
  0xc5   : >> { %v634_v53 = vadd.f32 %v633_v60, %v608_v0  ;;  %vm644_vm2 = vcmp.eq.s32.totalorder %v641_v20, 2  ;;  %vm649_vm3 = vcmp.eq.s32.totalorder %v641_v20, 1  ;;  %vm653_vm4 = vcmp.eq.s32.totalorder %v641_v20, 0 }
  0xc6   : >> { %v648_v32 = vsel %vm644_vm2, %v646_v47, %v647_v31 }
  0xc7   : >> { %v635_v5 = vmul.f32 %v634_v53, %v1696_v51  ;;  %v652_v7 = vsel %vm649_vm3, %v651_v8, %v648_v32 }
  0xc8   : >> { %v656_v33 = vsel %vm653_vm4, %v655_v2, %v652_v7 }
  0xc9   : >> { %v636_v56 = vadd.f32 %v635_v5, %v597_v21  ;;  %v657_v15 = vshrl.u32 %v656_v33, %v642_v52 }
  0xca   : > { %286 = sbr.rel (!%p284_p8) target bundleno = 116 (0x74), region = 110 }
  0xcb   : >> { %v658_v11 = vand.u32 1, %v657_v15  ;;  %v663_v16 = vmul.f32 %v636_v56, %v571_v1 }
  0xcd   : >> { %vm659_vm7 = vcmp.ne.s32.totalorder %v658_v11, 0 }
  0xce   : >> { %vm662_vm9 = vmand %vm661_vm8, %vm659_vm7 }
  0xcf   : >> { %v664_v51 = vsel %vm662_vm9, %v663_v16, nan }
  0xd0   : >> { %666 = vst [vmem:[%s665_s5] sm:$0xff] %v664_v51 }
  0xd1   : > { %1051 = shalt.err (!%p1048_p10)
}
  0xd2   : > { %s1052_s29 = scalar_lea.hbm %s1809_s23, 384  ;;  %s1056_s1 = scalar_lea.hbm %s1859_s4, 768 }
  0xd3   : > { %p1053_p1 = scmp.ne.s32.totalorder %s1809_s23, %s1052_s29  ;;  %p1057_p4 = scmp.lt.u32.totalorder %s1809_s23, %s1859_s4 }
  0xd4   : > { %p1058_p8 = scmp.lt.u32.totalorder %s1056_s1, %s1052_s29  ;;  %p1060_p9 = scmp.lt.u32.totalorder %s1052_s29, %s1809_s23 }
  0xd5   : > { %p1054_p2 = pnand %p1053_p1, %p1897_p11 }
  0xd6   : > { %p1059_p12 = por %p1058_p8, %p1057_p4 }
  0xd7   : > { %p1055_p7 = pneg %p1054_p2 }
  0xd8   : > { %p1061_p5 = por %p1060_p9, %p1059_p12 }
  0xda   : > { %p1062_p6 = pnand %p1061_p5, %p1055_p7 }
  0xdc   : > { %1065 = shalt.err (!%p1062_p6)
}
  0xdd   : > { %s1132_s3 = smov 128   ;;  %s1133_s24 = smov 8  }
  0xde   : > { %919 = dma.vmem_to_hbm [thread:$0]  (%p1897_p11), %s1811_s26, 384, %s1809_s23, %s668_s10, %s1132_s3, %s1132_s3, %s1133_s24  }
  0xdf PF: > { %s696_s30 = sand.u32 1, %s1104_s15   ;;  %p1898_p3 = scmp.ne.s32.totalorder %s1876_s28, 0 }
  0xe0   : > { %s697_s14 = scalar_lea.sflag [#allocation4], %s696_s30 }
  0xe1   : > { %p932_p0 = pnand %p805_p13, %p1898_p3 }
  0xe3   : > { %1099 = dma.done.wait (!%p932_p0), %s697_s14, 384  }
  0xe4   : > { %1101 = vsyncadd (!%p932_p0), %s697_s14, 4294966912  ;;  %s1899_s22 = sld [smem:[#allocation18_spill]]  ;;  %s1900_s17 = sld [smem:[#allocation19_spill]] }
  0xe5   : > { %p19_p10 = scmp.ge.s32.totalorder %s1184_s21, 4   ;;  %s1901_s15 = smov %s1108_s16 }
  0xe6   : > { %s1903_s18 = smov %s1184_s21 }
  0xe7   :  { %21 = sbr.rel (!%p19_p10) target bundleno = 12 (0xc), region = 121 }
  0xea   : > { %s1902_s16 = smov %s1899_s22 }
  0xee   :  { %702 = vsyncpa [#allocation3], 1 }
  0xef   :  { %704 = vsyncpa [#allocation3 + $0x1], 1 }
  0xf0   :  { %705 = vsyncpa [#allocation4], 1 }
  0xf1   :  { %707 = vsyncpa [#allocation4 + $0x1], 1 }
  0xf2   :  { %708 = vsyncpa [#allocation5], 1 }
  0xf3   :  { %710 = vsyncpa [#allocation5 + $0x1], 1 }
  0xf4   :  { %711 = vsyncpa [#allocation8], 1 }

</bundles_post_ra>
